<compile_context>
chip_gen: v5e
topology: v5e:2x2
jax: 0.10.0
libtpu: 0.0.40
codegen_flags: <defaults>
</compile_context>

<pallas_src>
import math
import functools

import jax
import jax.numpy as jnp
import numpy as np
from jax.experimental import pallas as pl
from jax.experimental.pallas import tpu as pltpu


# ----------------------------------------------------------------------------
# Pallas kernel: one grid step processes TB windows.
# ----------------------------------------------------------------------------
def window_attention_kernel(x_ref, wqkv_ref, scale_ref, bias_ref, projw_ref,
                            projb_ref, o_ref, merged_ref, *,
                            num_heads, windows_per_block, tokens_per_window):
    TB = windows_per_block
    N = tokens_per_window
    C = x_ref.shape[-1]
    D = C // num_heads
    R = TB * N

    # (TB, N, C) -> (TB*N, C): merge leading dims, minor dim unchanged (free).
    xm = x_ref[...].reshape(R, C)

    # Fused QKV projection: one wide matmul, f32 accumulation on the MXU.
    qkv = jnp.dot(xm, wqkv_ref[...], preferred_element_type=jnp.float32)    # (R, 3C)

    for h in range(num_heads):                       # static unroll over heads
        q = qkv[:, 0 * C + h * D:0 * C + (h + 1) * D]                        # (R, D)
        k = qkv[:, 1 * C + h * D:1 * C + (h + 1) * D]
        v = qkv[:, 2 * C + h * D:2 * C + (h + 1) * D]

        # F.normalize(dim=-1, eps=1e-12) == x * rsqrt(max(||x||^2, eps^2)); rsqrt -> EUP.
        qn = q * jax.lax.rsqrt(jnp.maximum(jnp.sum(q * q, -1, keepdims=True), 1e-24))
        kn = k * jax.lax.rsqrt(jnp.maximum(jnp.sum(k * k, -1, keepdims=True), 1e-24))

        # Clamped/exp'd logit scale applied to q (R*D elems, not the R*N logits).
        qn = qn * scale_ref[h]

        qb = qn.reshape(TB, N, D)
        kb = kn.reshape(TB, N, D)
        vb = v.astype(jnp.bfloat16).reshape(TB, N, D)

        # Cosine-attention logits, batched over the TB windows of this block.
        attn = jnp.einsum('bnd,bmd->bnm', qb, kb,
                          preferred_element_type=jnp.float32)               # (TB, N, N)
        attn = attn + bias_ref[h]                    # 16*sigmoid(rel-pos bias), (N, N)

        # Softmax along the key axis, in f32.
        attn = attn - jnp.max(attn, axis=-1, keepdims=True)
        p = jnp.exp(attn)
        p = p * pl.reciprocal(jnp.sum(p, axis=-1, keepdims=True), approx=True)

        out_h = jnp.einsum('bnm,bmd->bnd', p.astype(jnp.bfloat16), vb,
                           preferred_element_type=jnp.float32)              # (TB, N, D)

        # Merge heads into VMEM scratch at static column offsets (no concat).
        merged_ref[:, h * D:(h + 1) * D] = out_h.reshape(R, D)

    # Output projection: one (R, C) @ (C, C) matmul + bias.
    y = jnp.dot(merged_ref[...].astype(jnp.bfloat16), projw_ref[...],
                preferred_element_type=jnp.float32)
    y = y + projb_ref[...]
    y3 = y.reshape(TB, N, C).astype(o_ref.dtype)

    # Lane-dense store: the output block is a (TB, N*C) slab; write each token's
    # C channels at a static lane offset so the output buffer / HBM DMA is dense.
    for n in range(N):
        o_ref[:, n * C:(n + 1) * C] = y3[:, n, :]


# ----------------------------------------------------------------------------
# Block-size selection (generation-aware VMEM budget; v7x has 64 MiB VMEM).
# ----------------------------------------------------------------------------
def _pick_windows_per_block(batch_windows, tokens, channels, num_heads,
                            target_rows=256, vmem_budget_bytes=24 * 1024 * 1024):
    """Pick TB (windows per grid step).

    target_rows ~ MXU M dim (256 feeds v6e/v7x's 256x256 MXU; >=128 suffices on
    v5e).  TB is a multiple of 8 (sublane / flat-output block constraint) unless
    a single block covers the whole batch, and is shrunk if a rough per-block
    VMEM estimate exceeds the budget (kept well under v7x's 32 MiB default
    scoped limit / 64 MiB physical).
    """
    def vmem_estimate(tb):
        rows = tb * tokens
        x_blk = rows * channels * 2 * 2              # bf16 input, double-buffered
        o_blk = rows * channels * 4 * 2              # f32 flat output, double-buffered
        qkv = rows * 3 * channels * 4                # f32 intermediate
        attn = tb * tokens * tokens * 4 * 2          # logits + probs (live per head)
        merged = rows * channels * 4                 # scratch
        weights = (channels * 3 * channels + channels * channels) * 2 * 2
        bias = num_heads * tokens * tokens * 4 * 2
        return x_blk + o_blk + qkv + attn + merged + weights + bias

    tb = max(1, -(-target_rows // tokens))           # ceil(target_rows / tokens)
    tb = -(-tb // 8) * 8                             # round up to a multiple of 8
    while tb > 8 and vmem_estimate(tb) > vmem_budget_bytes:
        tb -= 8
    if tb >= batch_windows:
        return batch_windows                         # one block covers the batch
    return tb


# ----------------------------------------------------------------------------
# Plain-JAX glue: relative position bias (cpb_mlp + gather), parameter reshape.
# ----------------------------------------------------------------------------
def _relative_coords_table(window_size, pretrained_window_size=(0, 0)):
    Wh, Ww = window_size
    rch = jnp.arange(-(Wh - 1), Wh, dtype=jnp.float32)
    rcw = jnp.arange(-(Ww - 1), Ww, dtype=jnp.float32)
    gh, gw = jnp.meshgrid(rch, rcw, indexing="ij")
    table = jnp.stack([gh, gw], axis=-1)[None]           # (1, 2Wh-1, 2Ww-1, 2)
    if pretrained_window_size[0] > 0:
        denom = jnp.array([pretrained_window_size[0] - 1,
                           pretrained_window_size[1] - 1], jnp.float32)
    else:
        denom = jnp.array([Wh - 1, Ww - 1], jnp.float32)
    table = table / denom
    table = table * 8.0
    table = jnp.sign(table) * jnp.log2(jnp.abs(table) + 1.0) / math.log2(8.0)
    return table


def _relative_position_index(window_size):
    Wh, Ww = window_size
    gh, gw = jnp.meshgrid(jnp.arange(Wh), jnp.arange(Ww), indexing="ij")
    coords = jnp.stack([gh, gw]).reshape(2, -1)           # (2, N)
    rel = coords[:, :, None] - coords[:, None, :]         # (2, N, N)
    rel = rel.transpose(1, 2, 0)                          # (N, N, 2)
    rel = rel + jnp.array([Wh - 1, Ww - 1])
    rel = rel.at[:, :, 0].multiply(2 * Ww - 1)
    return rel.sum(-1)                                    # (N, N) int32


def relative_position_bias(params, window_size, num_heads):
    Wh, Ww = window_size
    N = Wh * Ww
    table_in = _relative_coords_table(window_size).reshape(-1, 2)         # (T, 2)
    h1 = jnp.maximum(table_in @ params["cpb_w1"].T + params["cpb_b1"], 0.0)
    bias_table = h1 @ params["cpb_w2"].T                                   # (T, H)
    idx = _relative_position_index(window_size).reshape(-1)
    bias = bias_table[idx].reshape(N, N, num_heads).transpose(2, 0, 1)     # (H, N, N)
    return 16.0 * jax.nn.sigmoid(bias)


# ----------------------------------------------------------------------------
# Wrapper: parameter prep (bf16 casts), padding, pallas_call.
# ----------------------------------------------------------------------------
def window_attention(x, params, window_size, num_heads, *, windows_per_block=None):
    B_, N, C = x.shape
    assert N == window_size[0] * window_size[1]
    assert C % num_heads == 0
    out_dtype = x.dtype

    TB = windows_per_block or _pick_windows_per_block(B_, N, C, num_heads)
    Bp = -(-B_ // TB) * TB
    grid = (Bp // TB,)

    # bf16 operands (halves DMA, doubles MXU rate); all dots accumulate in f32.
    xb = x.astype(jnp.bfloat16)
    if Bp != B_:
        xb = jnp.concatenate(
            [xb, jnp.zeros((Bp - B_, N, C), jnp.bfloat16)], axis=0)

    # qkv.weight is (3C, C); torch Linear computes x @ W^T.
    wqkv = params["qkv_w"].T.astype(jnp.bfloat16)                 # (C, 3C)
    projw = params["proj_w"].T.astype(jnp.bfloat16)               # (C, C)
    projb = params["proj_b"].reshape(1, C).astype(jnp.float32)

    # logit_scale: clamp(max=log(1/0.01)) then exp -> per-head scalar (SMEM).
    scale = jnp.exp(jnp.minimum(params["logit_scale"], math.log(1.0 / 0.01)))
    scale = scale.reshape(num_heads).astype(jnp.float32)

    # Relative position bias: tiny parameter-only precompute, kept in f32.
    rel_bias = relative_position_bias(params, window_size, num_heads)   # (H, N, N)

    kernel = functools.partial(
        window_attention_kernel, num_heads=num_heads,
        windows_per_block=TB, tokens_per_window=N)

    # Note: constant-index weight/bias inputs are tiny here so the default
    # double-buffering is left in place (pl.Buffered(1) would reclaim ~10 KB).
    out_flat = pl.pallas_call(
        kernel,
        out_shape=jax.ShapeDtypeStruct((Bp, N * C), out_dtype),
        grid=grid,
        in_specs=[
            pl.BlockSpec((TB, N, C), lambda b: (b, 0, 0)),             # x (bf16)
            pl.BlockSpec((C, 3 * C), lambda b: (0, 0)),                # qkv W^T (bf16)
            pl.BlockSpec(memory_space=pltpu.MemorySpace.SMEM),         # logit scales
            pl.BlockSpec((num_heads, N, N), lambda b: (0, 0, 0)),      # rel-pos bias
            pl.BlockSpec((C, C), lambda b: (0, 0)),                    # proj W^T (bf16)
            pl.BlockSpec((1, C), lambda b: (0, 0)),                    # proj bias
        ],
        out_specs=pl.BlockSpec((TB, N * C), lambda b: (b, 0)),         # lane-dense out
        scratch_shapes=[pltpu.VMEM((TB * N, C), jnp.float32)],         # merged heads
        compiler_params=pltpu.CompilerParams(
            dimension_semantics=("parallel",),   # lets v7x's 2 TCs split the blocks
            vmem_limit_bytes=32 * 1024 * 1024),
    )(xb, wqkv, scale, rel_bias, projw, projb)

    return out_flat.reshape(Bp, N, C)[:B_]


# ----------------------------------------------------------------------------
# Pure-JAX reference (mirrors the PyTorch forward exactly, full f32).
# ----------------------------------------------------------------------------
def reference_forward(x, params, window_size, num_heads):
    B_, N, C = x.shape
    D = C // num_heads
    qkv = x @ params["qkv_w"].T                            # bias-free (see note)
    qkv = qkv.reshape(B_, N, 3, num_heads, D).transpose(2, 0, 3, 1, 4)
    q, k, v = qkv[0], qkv[1], qkv[2]
    qn = q / jnp.maximum(jnp.linalg.norm(q, axis=-1, keepdims=True), 1e-12)
    kn = k / jnp.maximum(jnp.linalg.norm(k, axis=-1, keepdims=True), 1e-12)
    attn = qn @ jnp.swapaxes(kn, -2, -1)
    scale = jnp.exp(jnp.minimum(params["logit_scale"], math.log(1.0 / 0.01)))
    attn = attn * scale[None]                              # (1, H, 1, 1) broadcast
    bias = relative_position_bias(params, window_size, num_heads)
    attn = attn + bias[None]
    attn = jax.nn.softmax(attn, axis=-1)
    out = (attn @ v).transpose(0, 2, 1, 3).reshape(B_, N, C)
    return out @ params["proj_w"].T + params["proj_b"]


# ----------------------------------------------------------------------------
if __name__ == "__main__":
    dim = 32
    num_heads = 4
    window_size = (4, 4)
    N = window_size[0] * window_size[1]        # 16
    B_ = 2                                      # num_windows * batch

    key = jax.random.PRNGKey(0)
    ks = jax.random.split(key, 8)

    params = {
        "qkv_w": (jax.random.normal(ks[0], (3 * dim, dim)) * 0.05).astype(jnp.float32),
        "proj_w": (jax.random.normal(ks[1], (dim, dim)) * 0.05).astype(jnp.float32),
        "proj_b": (jax.random.normal(ks[2], (dim,)) * 0.01).astype(jnp.float32),
        "logit_scale": jnp.log(10.0 * jnp.ones((num_heads, 1, 1), jnp.float32)),
        "cpb_w1": (jax.random.normal(ks[3], (512, 2)) * 0.1).astype(jnp.float32),
        "cpb_b1": (jax.random.normal(ks[4], (512,)) * 0.1).astype(jnp.float32),
        "cpb_w2": (jax.random.normal(ks[5], (num_heads, 512)) * 0.1).astype(jnp.float32),
    }

    x = jax.random.normal(ks[6], (B_, N, dim), dtype=jnp.float32)

    out = window_attention(x, params, window_size, num_heads)
    out = jax.block_until_ready(out)

    ref = jax.block_until_ready(reference_forward(x, params, window_size, num_heads))

    assert out.shape == (B_, N, dim), out.shape
    # Tolerance covers bf16 operand rounding (all matmuls accumulate in f32,
    # normalization / softmax in f32).
    np.testing.assert_allclose(np.asarray(out), np.asarray(ref), rtol=2e-2, atol=2e-2)

    print("KERNEL_OK")
</pallas_src>

<mosaic_0001>
module attributes {stable_mosaic.version = 11 : i64} {
  func.func @window_attention_kernel(%arg0: i32, %arg1: memref<2x16x32xbf16, #tpu.memory_space<vmem>>, %arg2: memref<32x96xbf16, #tpu.memory_space<vmem>>, %arg3: memref<4xf32, #tpu.memory_space<smem>>, %arg4: memref<4x16x16xf32, #tpu.memory_space<vmem>>, %arg5: memref<32x32xbf16, #tpu.memory_space<vmem>>, %arg6: memref<1x32xf32, #tpu.memory_space<vmem>>, %arg7: memref<2x512xf32, #tpu.memory_space<vmem>>, %arg8: memref<32x32xf32, #tpu.memory_space<vmem>>) attributes {dimension_semantics = [#tpu.dimension_semantics<parallel>], iteration_bounds = array<i64: 1>, scalar_prefetch = 0 : i64, scratch_operands = 1 : i64, tpu.core_type = #tpu.core_type<tc>, window_params = [{transform_indices = @transform_0, window_bounds = array<i64: 2, 16, 32>}, {pipeline_mode = #tpu.pipeline_mode<synchronous>, transform_indices = @transform_1, window_bounds = array<i64: 32, 96>}, {transform_indices = @transform_2, window_bounds = array<i64: 4>}, {pipeline_mode = #tpu.pipeline_mode<synchronous>, transform_indices = @transform_3, window_bounds = array<i64: 4, 16, 16>}, {pipeline_mode = #tpu.pipeline_mode<synchronous>, transform_indices = @transform_4, window_bounds = array<i64: 32, 32>}, {pipeline_mode = #tpu.pipeline_mode<synchronous>, transform_indices = @transform_5, window_bounds = array<i64: 1, 32>}, {transform_indices = @transform_6, window_bounds = array<i64: 2, 512>}]} {
    %c0 = arith.constant 0 : index
    %c0_0 = arith.constant 0 : index
    %c0_1 = arith.constant 0 : index
    %0 = vector.load %arg1[%c0, %c0_0, %c0_1] : memref<2x16x32xbf16, #tpu.memory_space<vmem>>, vector<2x16x32xbf16>
    %1 = vector.shape_cast %0 : vector<2x16x32xbf16> to vector<32x32xbf16>
    %c0_2 = arith.constant 0 : index
    %c0_3 = arith.constant 0 : index
    %2 = vector.load %arg2[%c0_2, %c0_3] : memref<32x96xbf16, #tpu.memory_space<vmem>>, vector<32x96xbf16>
    %cst = arith.constant dense<0.000000e+00> : vector<32x96xf32>
    %3 = tpu.matmul %1, %2, %cst {dimension_numbers = #tpu.dot_dimension_numbers<[1], [0], [0], [1], [0, 0, 1, 1], [], []>} : vector<32x32xbf16>, vector<32x96xbf16>, vector<32x96xf32> -> vector<32x96xf32>
    %4 = vector.extract_strided_slice %3 {offsets = [0, 0], sizes = [32, 8], strides = [1, 1]} : vector<32x96xf32> to vector<32x8xf32>
    %5 = vector.extract_strided_slice %3 {offsets = [0, 32], sizes = [32, 8], strides = [1, 1]} : vector<32x96xf32> to vector<32x8xf32>
    %6 = vector.extract_strided_slice %3 {offsets = [0, 64], sizes = [32, 8], strides = [1, 1]} : vector<32x96xf32> to vector<32x8xf32>
    %7 = arith.mulf %4, %4 : vector<32x8xf32>
    %cst_4 = arith.constant dense<0.000000e+00> : vector<32xf32>
    %8 = vector.multi_reduction <add>, %7, %cst_4 [1] : vector<32x8xf32> to vector<32xf32>
    %9 = vector.shape_cast %8 : vector<32xf32> to vector<32x1xf32>
    %cst_5 = arith.constant 1.000000e-24 : f32
    %10 = vector.broadcast %cst_5 : f32 to vector<32x1xf32>
    %11 = arith.maximumf %9, %10 : vector<32x1xf32>
    %12 = math.rsqrt %11 : vector<32x1xf32>
    %13 = vector.broadcast %12 : vector<32x1xf32> to vector<32x8xf32>
    %14 = arith.mulf %4, %13 : vector<32x8xf32>
    %15 = arith.mulf %5, %5 : vector<32x8xf32>
    %cst_6 = arith.constant dense<0.000000e+00> : vector<32xf32>
    %16 = vector.multi_reduction <add>, %15, %cst_6 [1] : vector<32x8xf32> to vector<32xf32>
    %17 = vector.shape_cast %16 : vector<32xf32> to vector<32x1xf32>
    %cst_7 = arith.constant 1.000000e-24 : f32
    %18 = vector.broadcast %cst_7 : f32 to vector<32x1xf32>
    %19 = arith.maximumf %17, %18 : vector<32x1xf32>
    %20 = math.rsqrt %19 : vector<32x1xf32>
    %21 = vector.broadcast %20 : vector<32x1xf32> to vector<32x8xf32>
    %22 = arith.mulf %5, %21 : vector<32x8xf32>
    %c0_8 = arith.constant 0 : index
    %23 = memref.load %arg3[%c0_8] : memref<4xf32, #tpu.memory_space<smem>>
    %24 = vector.broadcast %23 : f32 to vector<32x8xf32>
    %25 = arith.mulf %14, %24 : vector<32x8xf32>
    %26 = vector.shape_cast %25 : vector<32x8xf32> to vector<2x16x8xf32>
    %27 = vector.shape_cast %22 : vector<32x8xf32> to vector<2x16x8xf32>
    %28 = arith.truncf %6 : vector<32x8xf32> to vector<32x8xbf16>
    %29 = vector.shape_cast %28 : vector<32x8xbf16> to vector<2x16x8xbf16>
    "tpu.trace_start"() <{level = 10 : i32, message = "bnd,bmd->bnm"}> : () -> ()
    %cst_9 = arith.constant dense<0.000000e+00> : vector<2x16x16xf32>
    %30 = tpu.matmul %26, %27, %cst_9 {dimension_numbers = #tpu.dot_dimension_numbers<[2], [2], [1], [1], [0, 0, 0, 1, 1, 1], [0], [0]>} : vector<2x16x8xf32>, vector<2x16x8xf32>, vector<2x16x16xf32> -> vector<2x16x16xf32>
    "tpu.trace_stop"() : () -> ()
    %c0_10 = arith.constant 0 : index
    %c0_11 = arith.constant 0 : index
    %c0_12 = arith.constant 0 : index
    %31 = vector.load %arg4[%c0_10, %c0_11, %c0_12] : memref<4x16x16xf32, #tpu.memory_space<vmem>>, vector<1x16x16xf32>
    %32 = vector.shape_cast %31 : vector<1x16x16xf32> to vector<16x16xf32>
    %33 = vector.shape_cast %32 : vector<16x16xf32> to vector<1x16x16xf32>
    %34 = vector.broadcast %33 : vector<1x16x16xf32> to vector<2x16x16xf32>
    %35 = arith.addf %30, %34 : vector<2x16x16xf32>
    %cst_13 = arith.constant dense<0xFF800000> : vector<2x16xf32>
    %36 = vector.multi_reduction <maximumf>, %35, %cst_13 [2] : vector<2x16x16xf32> to vector<2x16xf32>
    %37 = vector.shape_cast %36 : vector<2x16xf32> to vector<2x16x1xf32>
    %38 = vector.broadcast %37 : vector<2x16x1xf32> to vector<2x16x16xf32>
    %39 = arith.subf %35, %38 : vector<2x16x16xf32>
    %40 = math.exp %39 : vector<2x16x16xf32>
    %cst_14 = arith.constant dense<0.000000e+00> : vector<2x16xf32>
    %41 = vector.multi_reduction <add>, %40, %cst_14 [2] : vector<2x16x16xf32> to vector<2x16xf32>
    %42 = vector.shape_cast %41 : vector<2x16xf32> to vector<2x16x1xf32>
    %43 = tpu.reciprocal %42 {approx = true} : vector<2x16x1xf32> -> vector<2x16x1xf32>
    %44 = vector.broadcast %43 : vector<2x16x1xf32> to vector<2x16x16xf32>
    %45 = arith.mulf %40, %44 : vector<2x16x16xf32>
    %46 = arith.truncf %45 : vector<2x16x16xf32> to vector<2x16x16xbf16>
    "tpu.trace_start"() <{level = 10 : i32, message = "bnm,bmd->bnd"}> : () -> ()
    %cst_15 = arith.constant dense<0.000000e+00> : vector<2x16x8xf32>
    %47 = tpu.matmul %46, %29, %cst_15 {dimension_numbers = #tpu.dot_dimension_numbers<[2], [1], [1], [2], [0, 0, 0, 1, 1, 2], [0], [0]>} : vector<2x16x16xbf16>, vector<2x16x8xbf16>, vector<2x16x8xf32> -> vector<2x16x8xf32>
    "tpu.trace_stop"() : () -> ()
    %48 = vector.shape_cast %47 : vector<2x16x8xf32> to vector<32x8xf32>
    %c0_16 = arith.constant 0 : index
    %c0_17 = arith.constant 0 : index
    %49 = vector.load %arg8[%c0_16, %c0_17] : memref<32x32xf32, #tpu.memory_space<vmem>>, vector<32x8xf32>
    tpu.vector_store %arg8[%c0_16, %c0_17], %48 {strides = array<i32>} : memref<32x32xf32, #tpu.memory_space<vmem>>, vector<32x8xf32>,
    %50 = vector.extract_strided_slice %3 {offsets = [0, 8], sizes = [32, 8], strides = [1, 1]} : vector<32x96xf32> to vector<32x8xf32>
    %51 = vector.extract_strided_slice %3 {offsets = [0, 40], sizes = [32, 8], strides = [1, 1]} : vector<32x96xf32> to vector<32x8xf32>
    %52 = vector.extract_strided_slice %3 {offsets = [0, 72], sizes = [32, 8], strides = [1, 1]} : vector<32x96xf32> to vector<32x8xf32>
    %53 = arith.mulf %50, %50 : vector<32x8xf32>
    %cst_18 = arith.constant dense<0.000000e+00> : vector<32xf32>
    %54 = vector.multi_reduction <add>, %53, %cst_18 [1] : vector<32x8xf32> to vector<32xf32>
    %55 = vector.shape_cast %54 : vector<32xf32> to vector<32x1xf32>
    %cst_19 = arith.constant 1.000000e-24 : f32
    %56 = vector.broadcast %cst_19 : f32 to vector<32x1xf32>
    %57 = arith.maximumf %55, %56 : vector<32x1xf32>
    %58 = math.rsqrt %57 : vector<32x1xf32>
    %59 = vector.broadcast %58 : vector<32x1xf32> to vector<32x8xf32>
    %60 = arith.mulf %50, %59 : vector<32x8xf32>
    %61 = arith.mulf %51, %51 : vector<32x8xf32>
    %cst_20 = arith.constant dense<0.000000e+00> : vector<32xf32>
    %62 = vector.multi_reduction <add>, %61, %cst_20 [1] : vector<32x8xf32> to vector<32xf32>
    %63 = vector.shape_cast %62 : vector<32xf32> to vector<32x1xf32>
    %cst_21 = arith.constant 1.000000e-24 : f32
    %64 = vector.broadcast %cst_21 : f32 to vector<32x1xf32>
    %65 = arith.maximumf %63, %64 : vector<32x1xf32>
    %66 = math.rsqrt %65 : vector<32x1xf32>
    %67 = vector.broadcast %66 : vector<32x1xf32> to vector<32x8xf32>
    %68 = arith.mulf %51, %67 : vector<32x8xf32>
    %c1 = arith.constant 1 : index
    %69 = memref.load %arg3[%c1] : memref<4xf32, #tpu.memory_space<smem>>
    %70 = vector.broadcast %69 : f32 to vector<32x8xf32>
    %71 = arith.mulf %60, %70 : vector<32x8xf32>
    %72 = vector.shape_cast %71 : vector<32x8xf32> to vector<2x16x8xf32>
    %73 = vector.shape_cast %68 : vector<32x8xf32> to vector<2x16x8xf32>
    %74 = arith.truncf %52 : vector<32x8xf32> to vector<32x8xbf16>
    %75 = vector.shape_cast %74 : vector<32x8xbf16> to vector<2x16x8xbf16>
    "tpu.trace_start"() <{level = 10 : i32, message = "bnd,bmd->bnm"}> : () -> ()
    %cst_22 = arith.constant dense<0.000000e+00> : vector<2x16x16xf32>
    %76 = tpu.matmul %72, %73, %cst_22 {dimension_numbers = #tpu.dot_dimension_numbers<[2], [2], [1], [1], [0, 0, 0, 1, 1, 1], [0], [0]>} : vector<2x16x8xf32>, vector<2x16x8xf32>, vector<2x16x16xf32> -> vector<2x16x16xf32>
    "tpu.trace_stop"() : () -> ()
    %c1_23 = arith.constant 1 : index
    %c0_24 = arith.constant 0 : index
    %c0_25 = arith.constant 0 : index
    %77 = vector.load %arg4[%c1_23, %c0_24, %c0_25] : memref<4x16x16xf32, #tpu.memory_space<vmem>>, vector<1x16x16xf32>
    %78 = vector.shape_cast %77 : vector<1x16x16xf32> to vector<16x16xf32>
    %79 = vector.shape_cast %78 : vector<16x16xf32> to vector<1x16x16xf32>
    %80 = vector.broadcast %79 : vector<1x16x16xf32> to vector<2x16x16xf32>
    %81 = arith.addf %76, %80 : vector<2x16x16xf32>
    %cst_26 = arith.constant dense<0xFF800000> : vector<2x16xf32>
    %82 = vector.multi_reduction <maximumf>, %81, %cst_26 [2] : vector<2x16x16xf32> to vector<2x16xf32>
    %83 = vector.shape_cast %82 : vector<2x16xf32> to vector<2x16x1xf32>
    %84 = vector.broadcast %83 : vector<2x16x1xf32> to vector<2x16x16xf32>
    %85 = arith.subf %81, %84 : vector<2x16x16xf32>
    %86 = math.exp %85 : vector<2x16x16xf32>
    %cst_27 = arith.constant dense<0.000000e+00> : vector<2x16xf32>
    %87 = vector.multi_reduction <add>, %86, %cst_27 [2] : vector<2x16x16xf32> to vector<2x16xf32>
    %88 = vector.shape_cast %87 : vector<2x16xf32> to vector<2x16x1xf32>
    %89 = tpu.reciprocal %88 {approx = true} : vector<2x16x1xf32> -> vector<2x16x1xf32>
    %90 = vector.broadcast %89 : vector<2x16x1xf32> to vector<2x16x16xf32>
    %91 = arith.mulf %86, %90 : vector<2x16x16xf32>
    %92 = arith.truncf %91 : vector<2x16x16xf32> to vector<2x16x16xbf16>
    "tpu.trace_start"() <{level = 10 : i32, message = "bnm,bmd->bnd"}> : () -> ()
    %cst_28 = arith.constant dense<0.000000e+00> : vector<2x16x8xf32>
    %93 = tpu.matmul %92, %75, %cst_28 {dimension_numbers = #tpu.dot_dimension_numbers<[2], [1], [1], [2], [0, 0, 0, 1, 1, 2], [0], [0]>} : vector<2x16x16xbf16>, vector<2x16x8xbf16>, vector<2x16x8xf32> -> vector<2x16x8xf32>
    "tpu.trace_stop"() : () -> ()
    %94 = vector.shape_cast %93 : vector<2x16x8xf32> to vector<32x8xf32>
    %c0_29 = arith.constant 0 : index
    %c8 = arith.constant 8 : index
    %95 = vector.load %arg8[%c0_29, %c8] : memref<32x32xf32, #tpu.memory_space<vmem>>, vector<32x8xf32>
    tpu.vector_store %arg8[%c0_29, %c8], %94 {strides = array<i32>} : memref<32x32xf32, #tpu.memory_space<vmem>>, vector<32x8xf32>,
    %96 = vector.extract_strided_slice %3 {offsets = [0, 16], sizes = [32, 8], strides = [1, 1]} : vector<32x96xf32> to vector<32x8xf32>
    %97 = vector.extract_strided_slice %3 {offsets = [0, 48], sizes = [32, 8], strides = [1, 1]} : vector<32x96xf32> to vector<32x8xf32>
    %98 = vector.extract_strided_slice %3 {offsets = [0, 80], sizes = [32, 8], strides = [1, 1]} : vector<32x96xf32> to vector<32x8xf32>
    %99 = arith.mulf %96, %96 : vector<32x8xf32>
    %cst_30 = arith.constant dense<0.000000e+00> : vector<32xf32>
    %100 = vector.multi_reduction <add>, %99, %cst_30 [1] : vector<32x8xf32> to vector<32xf32>
    %101 = vector.shape_cast %100 : vector<32xf32> to vector<32x1xf32>
    %cst_31 = arith.constant 1.000000e-24 : f32
    %102 = vector.broadcast %cst_31 : f32 to vector<32x1xf32>
    %103 = arith.maximumf %101, %102 : vector<32x1xf32>
    %104 = math.rsqrt %103 : vector<32x1xf32>
    %105 = vector.broadcast %104 : vector<32x1xf32> to vector<32x8xf32>
    %106 = arith.mulf %96, %105 : vector<32x8xf32>
    %107 = arith.mulf %97, %97 : vector<32x8xf32>
    %cst_32 = arith.constant dense<0.000000e+00> : vector<32xf32>
    %108 = vector.multi_reduction <add>, %107, %cst_32 [1] : vector<32x8xf32> to vector<32xf32>
    %109 = vector.shape_cast %108 : vector<32xf32> to vector<32x1xf32>
    %cst_33 = arith.constant 1.000000e-24 : f32
    %110 = vector.broadcast %cst_33 : f32 to vector<32x1xf32>
    %111 = arith.maximumf %109, %110 : vector<32x1xf32>
    %112 = math.rsqrt %111 : vector<32x1xf32>
    %113 = vector.broadcast %112 : vector<32x1xf32> to vector<32x8xf32>
    %114 = arith.mulf %97, %113 : vector<32x8xf32>
    %c2 = arith.constant 2 : index
    %115 = memref.load %arg3[%c2] : memref<4xf32, #tpu.memory_space<smem>>
    %116 = vector.broadcast %115 : f32 to vector<32x8xf32>
    %117 = arith.mulf %106, %116 : vector<32x8xf32>
    %118 = vector.shape_cast %117 : vector<32x8xf32> to vector<2x16x8xf32>
    %119 = vector.shape_cast %114 : vector<32x8xf32> to vector<2x16x8xf32>
    %120 = arith.truncf %98 : vector<32x8xf32> to vector<32x8xbf16>
    %121 = vector.shape_cast %120 : vector<32x8xbf16> to vector<2x16x8xbf16>
    "tpu.trace_start"() <{level = 10 : i32, message = "bnd,bmd->bnm"}> : () -> ()
    %cst_34 = arith.constant dense<0.000000e+00> : vector<2x16x16xf32>
    %122 = tpu.matmul %118, %119, %cst_34 {dimension_numbers = #tpu.dot_dimension_numbers<[2], [2], [1], [1], [0, 0, 0, 1, 1, 1], [0], [0]>} : vector<2x16x8xf32>, vector<2x16x8xf32>, vector<2x16x16xf32> -> vector<2x16x16xf32>
    "tpu.trace_stop"() : () -> ()
    %c2_35 = arith.constant 2 : index
    %c0_36 = arith.constant 0 : index
    %c0_37 = arith.constant 0 : index
    %123 = vector.load %arg4[%c2_35, %c0_36, %c0_37] : memref<4x16x16xf32, #tpu.memory_space<vmem>>, vector<1x16x16xf32>
    %124 = vector.shape_cast %123 : vector<1x16x16xf32> to vector<16x16xf32>
    %125 = vector.shape_cast %124 : vector<16x16xf32> to vector<1x16x16xf32>
    %126 = vector.broadcast %125 : vector<1x16x16xf32> to vector<2x16x16xf32>
    %127 = arith.addf %122, %126 : vector<2x16x16xf32>
    %cst_38 = arith.constant dense<0xFF800000> : vector<2x16xf32>
    %128 = vector.multi_reduction <maximumf>, %127, %cst_38 [2] : vector<2x16x16xf32> to vector<2x16xf32>
    %129 = vector.shape_cast %128 : vector<2x16xf32> to vector<2x16x1xf32>
    %130 = vector.broadcast %129 : vector<2x16x1xf32> to vector<2x16x16xf32>
    %131 = arith.subf %127, %130 : vector<2x16x16xf32>
    %132 = math.exp %131 : vector<2x16x16xf32>
    %cst_39 = arith.constant dense<0.000000e+00> : vector<2x16xf32>
    %133 = vector.multi_reduction <add>, %132, %cst_39 [2] : vector<2x16x16xf32> to vector<2x16xf32>
    %134 = vector.shape_cast %133 : vector<2x16xf32> to vector<2x16x1xf32>
    %135 = tpu.reciprocal %134 {approx = true} : vector<2x16x1xf32> -> vector<2x16x1xf32>
    %136 = vector.broadcast %135 : vector<2x16x1xf32> to vector<2x16x16xf32>
    %137 = arith.mulf %132, %136 : vector<2x16x16xf32>
    %138 = arith.truncf %137 : vector<2x16x16xf32> to vector<2x16x16xbf16>
    "tpu.trace_start"() <{level = 10 : i32, message = "bnm,bmd->bnd"}> : () -> ()
    %cst_40 = arith.constant dense<0.000000e+00> : vector<2x16x8xf32>
    %139 = tpu.matmul %138, %121, %cst_40 {dimension_numbers = #tpu.dot_dimension_numbers<[2], [1], [1], [2], [0, 0, 0, 1, 1, 2], [0], [0]>} : vector<2x16x16xbf16>, vector<2x16x8xbf16>, vector<2x16x8xf32> -> vector<2x16x8xf32>
    "tpu.trace_stop"() : () -> ()
    %140 = vector.shape_cast %139 : vector<2x16x8xf32> to vector<32x8xf32>
    %c0_41 = arith.constant 0 : index
    %c16 = arith.constant 16 : index
    %141 = vector.load %arg8[%c0_41, %c16] : memref<32x32xf32, #tpu.memory_space<vmem>>, vector<32x8xf32>
    tpu.vector_store %arg8[%c0_41, %c16], %140 {strides = array<i32>} : memref<32x32xf32, #tpu.memory_space<vmem>>, vector<32x8xf32>,
    %142 = vector.extract_strided_slice %3 {offsets = [0, 24], sizes = [32, 8], strides = [1, 1]} : vector<32x96xf32> to vector<32x8xf32>
    %143 = vector.extract_strided_slice %3 {offsets = [0, 56], sizes = [32, 8], strides = [1, 1]} : vector<32x96xf32> to vector<32x8xf32>
    %144 = vector.extract_strided_slice %3 {offsets = [0, 88], sizes = [32, 8], strides = [1, 1]} : vector<32x96xf32> to vector<32x8xf32>
    %145 = arith.mulf %142, %142 : vector<32x8xf32>
    %cst_42 = arith.constant dense<0.000000e+00> : vector<32xf32>
    %146 = vector.multi_reduction <add>, %145, %cst_42 [1] : vector<32x8xf32> to vector<32xf32>
    %147 = vector.shape_cast %146 : vector<32xf32> to vector<32x1xf32>
    %cst_43 = arith.constant 1.000000e-24 : f32
    %148 = vector.broadcast %cst_43 : f32 to vector<32x1xf32>
    %149 = arith.maximumf %147, %148 : vector<32x1xf32>
    %150 = math.rsqrt %149 : vector<32x1xf32>
    %151 = vector.broadcast %150 : vector<32x1xf32> to vector<32x8xf32>
    %152 = arith.mulf %142, %151 : vector<32x8xf32>
    %153 = arith.mulf %143, %143 : vector<32x8xf32>
    %cst_44 = arith.constant dense<0.000000e+00> : vector<32xf32>
    %154 = vector.multi_reduction <add>, %153, %cst_44 [1] : vector<32x8xf32> to vector<32xf32>
    %155 = vector.shape_cast %154 : vector<32xf32> to vector<32x1xf32>
    %cst_45 = arith.constant 1.000000e-24 : f32
    %156 = vector.broadcast %cst_45 : f32 to vector<32x1xf32>
    %157 = arith.maximumf %155, %156 : vector<32x1xf32>
    %158 = math.rsqrt %157 : vector<32x1xf32>
    %159 = vector.broadcast %158 : vector<32x1xf32> to vector<32x8xf32>
    %160 = arith.mulf %143, %159 : vector<32x8xf32>
    %c3 = arith.constant 3 : index
    %161 = memref.load %arg3[%c3] : memref<4xf32, #tpu.memory_space<smem>>
    %162 = vector.broadcast %161 : f32 to vector<32x8xf32>
    %163 = arith.mulf %152, %162 : vector<32x8xf32>
    %164 = vector.shape_cast %163 : vector<32x8xf32> to vector<2x16x8xf32>
    %165 = vector.shape_cast %160 : vector<32x8xf32> to vector<2x16x8xf32>
    %166 = arith.truncf %144 : vector<32x8xf32> to vector<32x8xbf16>
    %167 = vector.shape_cast %166 : vector<32x8xbf16> to vector<2x16x8xbf16>
    "tpu.trace_start"() <{level = 10 : i32, message = "bnd,bmd->bnm"}> : () -> ()
    %cst_46 = arith.constant dense<0.000000e+00> : vector<2x16x16xf32>
    %168 = tpu.matmul %164, %165, %cst_46 {dimension_numbers = #tpu.dot_dimension_numbers<[2], [2], [1], [1], [0, 0, 0, 1, 1, 1], [0], [0]>} : vector<2x16x8xf32>, vector<2x16x8xf32>, vector<2x16x16xf32> -> vector<2x16x16xf32>
    "tpu.trace_stop"() : () -> ()
    %c3_47 = arith.constant 3 : index
    %c0_48 = arith.constant 0 : index
    %c0_49 = arith.constant 0 : index
    %169 = vector.load %arg4[%c3_47, %c0_48, %c0_49] : memref<4x16x16xf32, #tpu.memory_space<vmem>>, vector<1x16x16xf32>
    %170 = vector.shape_cast %169 : vector<1x16x16xf32> to vector<16x16xf32>
    %171 = vector.shape_cast %170 : vector<16x16xf32> to vector<1x16x16xf32>
    %172 = vector.broadcast %171 : vector<1x16x16xf32> to vector<2x16x16xf32>
    %173 = arith.addf %168, %172 : vector<2x16x16xf32>
    %cst_50 = arith.constant dense<0xFF800000> : vector<2x16xf32>
    %174 = vector.multi_reduction <maximumf>, %173, %cst_50 [2] : vector<2x16x16xf32> to vector<2x16xf32>
    %175 = vector.shape_cast %174 : vector<2x16xf32> to vector<2x16x1xf32>
    %176 = vector.broadcast %175 : vector<2x16x1xf32> to vector<2x16x16xf32>
    %177 = arith.subf %173, %176 : vector<2x16x16xf32>
    %178 = math.exp %177 : vector<2x16x16xf32>
    %cst_51 = arith.constant dense<0.000000e+00> : vector<2x16xf32>
    %179 = vector.multi_reduction <add>, %178, %cst_51 [2] : vector<2x16x16xf32> to vector<2x16xf32>
    %180 = vector.shape_cast %179 : vector<2x16xf32> to vector<2x16x1xf32>
    %181 = tpu.reciprocal %180 {approx = true} : vector<2x16x1xf32> -> vector<2x16x1xf32>
    %182 = vector.broadcast %181 : vector<2x16x1xf32> to vector<2x16x16xf32>
    %183 = arith.mulf %178, %182 : vector<2x16x16xf32>
    %184 = arith.truncf %183 : vector<2x16x16xf32> to vector<2x16x16xbf16>
    "tpu.trace_start"() <{level = 10 : i32, message = "bnm,bmd->bnd"}> : () -> ()
    %cst_52 = arith.constant dense<0.000000e+00> : vector<2x16x8xf32>
    %185 = tpu.matmul %184, %167, %cst_52 {dimension_numbers = #tpu.dot_dimension_numbers<[2], [1], [1], [2], [0, 0, 0, 1, 1, 2], [0], [0]>} : vector<2x16x16xbf16>, vector<2x16x8xbf16>, vector<2x16x8xf32> -> vector<2x16x8xf32>
    "tpu.trace_stop"() : () -> ()
    %186 = vector.shape_cast %185 : vector<2x16x8xf32> to vector<32x8xf32>
    %c0_53 = arith.constant 0 : index
    %c24 = arith.constant 24 : index
    %187 = vector.load %arg8[%c0_53, %c24] : memref<32x32xf32, #tpu.memory_space<vmem>>, vector<32x8xf32>
    tpu.vector_store %arg8[%c0_53, %c24], %186 {strides = array<i32>} : memref<32x32xf32, #tpu.memory_space<vmem>>, vector<32x8xf32>,
    %c0_54 = arith.constant 0 : index
    %c0_55 = arith.constant 0 : index
    %188 = vector.load %arg8[%c0_54, %c0_55] : memref<32x32xf32, #tpu.memory_space<vmem>>, vector<32x32xf32>
    %189 = arith.truncf %188 : vector<32x32xf32> to vector<32x32xbf16>
    %c0_56 = arith.constant 0 : index
    %c0_57 = arith.constant 0 : index
    %190 = vector.load %arg5[%c0_56, %c0_57] : memref<32x32xbf16, #tpu.memory_space<vmem>>, vector<32x32xbf16>
    %cst_58 = arith.constant dense<0.000000e+00> : vector<32x32xf32>
    %191 = tpu.matmul %189, %190, %cst_58 {dimension_numbers = #tpu.dot_dimension_numbers<[1], [0], [0], [1], [0, 0, 1, 1], [], []>} : vector<32x32xbf16>, vector<32x32xbf16>, vector<32x32xf32> -> vector<32x32xf32>
    %c0_59 = arith.constant 0 : index
    %c0_60 = arith.constant 0 : index
    %192 = vector.load %arg6[%c0_59, %c0_60] : memref<1x32xf32, #tpu.memory_space<vmem>>, vector<1x32xf32>
    %193 = vector.broadcast %192 : vector<1x32xf32> to vector<32x32xf32>
    %194 = arith.addf %191, %193 : vector<32x32xf32>
    %195 = vector.shape_cast %194 : vector<32x32xf32> to vector<2x16x32xf32>
    %196 = vector.extract_strided_slice %195 {offsets = [0, 0, 0], sizes = [2, 1, 32], strides = [1, 1, 1]} : vector<2x16x32xf32> to vector<2x1x32xf32>
    %197 = vector.shape_cast %196 : vector<2x1x32xf32> to vector<2x32xf32>
    %c0_61 = arith.constant 0 : index
    %c0_62 = arith.constant 0 : index
    %198 = vector.load %arg7[%c0_61, %c0_62] : memref<2x512xf32, #tpu.memory_space<vmem>>, vector<2x32xf32>
    tpu.vector_store %arg7[%c0_61, %c0_62], %197 {strides = array<i32>} : memref<2x512xf32, #tpu.memory_space<vmem>>, vector<2x32xf32>,
    %199 = vector.extract_strided_slice %195 {offsets = [0, 1, 0], sizes = [2, 1, 32], strides = [1, 1, 1]} : vector<2x16x32xf32> to vector<2x1x32xf32>
    %200 = vector.shape_cast %199 : vector<2x1x32xf32> to vector<2x32xf32>
    %c0_63 = arith.constant 0 : index
    %c32 = arith.constant 32 : index
    %201 = vector.load %arg7[%c0_63, %c32] : memref<2x512xf32, #tpu.memory_space<vmem>>, vector<2x32xf32>
    tpu.vector_store %arg7[%c0_63, %c32], %200 {strides = array<i32>} : memref<2x512xf32, #tpu.memory_space<vmem>>, vector<2x32xf32>,
    %202 = vector.extract_strided_slice %195 {offsets = [0, 2, 0], sizes = [2, 1, 32], strides = [1, 1, 1]} : vector<2x16x32xf32> to vector<2x1x32xf32>
    %203 = vector.shape_cast %202 : vector<2x1x32xf32> to vector<2x32xf32>
    %c0_64 = arith.constant 0 : index
    %c64 = arith.constant 64 : index
    %204 = vector.load %arg7[%c0_64, %c64] : memref<2x512xf32, #tpu.memory_space<vmem>>, vector<2x32xf32>
    tpu.vector_store %arg7[%c0_64, %c64], %203 {strides = array<i32>} : memref<2x512xf32, #tpu.memory_space<vmem>>, vector<2x32xf32>,
    %205 = vector.extract_strided_slice %195 {offsets = [0, 3, 0], sizes = [2, 1, 32], strides = [1, 1, 1]} : vector<2x16x32xf32> to vector<2x1x32xf32>
    %206 = vector.shape_cast %205 : vector<2x1x32xf32> to vector<2x32xf32>
    %c0_65 = arith.constant 0 : index
    %c96 = arith.constant 96 : index
    %207 = vector.load %arg7[%c0_65, %c96] : memref<2x512xf32, #tpu.memory_space<vmem>>, vector<2x32xf32>
    tpu.vector_store %arg7[%c0_65, %c96], %206 {strides = array<i32>} : memref<2x512xf32, #tpu.memory_space<vmem>>, vector<2x32xf32>,
    %208 = vector.extract_strided_slice %195 {offsets = [0, 4, 0], sizes = [2, 1, 32], strides = [1, 1, 1]} : vector<2x16x32xf32> to vector<2x1x32xf32>
    %209 = vector.shape_cast %208 : vector<2x1x32xf32> to vector<2x32xf32>
    %c0_66 = arith.constant 0 : index
    %c128 = arith.constant 128 : index
    %210 = vector.load %arg7[%c0_66, %c128] : memref<2x512xf32, #tpu.memory_space<vmem>>, vector<2x32xf32>
    tpu.vector_store %arg7[%c0_66, %c128], %209 {strides = array<i32>} : memref<2x512xf32, #tpu.memory_space<vmem>>, vector<2x32xf32>,
    %211 = vector.extract_strided_slice %195 {offsets = [0, 5, 0], sizes = [2, 1, 32], strides = [1, 1, 1]} : vector<2x16x32xf32> to vector<2x1x32xf32>
    %212 = vector.shape_cast %211 : vector<2x1x32xf32> to vector<2x32xf32>
    %c0_67 = arith.constant 0 : index
    %c160 = arith.constant 160 : index
    %213 = vector.load %arg7[%c0_67, %c160] : memref<2x512xf32, #tpu.memory_space<vmem>>, vector<2x32xf32>
    tpu.vector_store %arg7[%c0_67, %c160], %212 {strides = array<i32>} : memref<2x512xf32, #tpu.memory_space<vmem>>, vector<2x32xf32>,
    %214 = vector.extract_strided_slice %195 {offsets = [0, 6, 0], sizes = [2, 1, 32], strides = [1, 1, 1]} : vector<2x16x32xf32> to vector<2x1x32xf32>
    %215 = vector.shape_cast %214 : vector<2x1x32xf32> to vector<2x32xf32>
    %c0_68 = arith.constant 0 : index
    %c192 = arith.constant 192 : index
    %216 = vector.load %arg7[%c0_68, %c192] : memref<2x512xf32, #tpu.memory_space<vmem>>, vector<2x32xf32>
    tpu.vector_store %arg7[%c0_68, %c192], %215 {strides = array<i32>} : memref<2x512xf32, #tpu.memory_space<vmem>>, vector<2x32xf32>,
    %217 = vector.extract_strided_slice %195 {offsets = [0, 7, 0], sizes = [2, 1, 32], strides = [1, 1, 1]} : vector<2x16x32xf32> to vector<2x1x32xf32>
    %218 = vector.shape_cast %217 : vector<2x1x32xf32> to vector<2x32xf32>
    %c0_69 = arith.constant 0 : index
    %c224 = arith.constant 224 : index
    %219 = vector.load %arg7[%c0_69, %c224] : memref<2x512xf32, #tpu.memory_space<vmem>>, vector<2x32xf32>
    tpu.vector_store %arg7[%c0_69, %c224], %218 {strides = array<i32>} : memref<2x512xf32, #tpu.memory_space<vmem>>, vector<2x32xf32>,
    %220 = vector.extract_strided_slice %195 {offsets = [0, 8, 0], sizes = [2, 1, 32], strides = [1, 1, 1]} : vector<2x16x32xf32> to vector<2x1x32xf32>
    %221 = vector.shape_cast %220 : vector<2x1x32xf32> to vector<2x32xf32>
    %c0_70 = arith.constant 0 : index
    %c256 = arith.constant 256 : index
    %222 = vector.load %arg7[%c0_70, %c256] : memref<2x512xf32, #tpu.memory_space<vmem>>, vector<2x32xf32>
    tpu.vector_store %arg7[%c0_70, %c256], %221 {strides = array<i32>} : memref<2x512xf32, #tpu.memory_space<vmem>>, vector<2x32xf32>,
    %223 = vector.extract_strided_slice %195 {offsets = [0, 9, 0], sizes = [2, 1, 32], strides = [1, 1, 1]} : vector<2x16x32xf32> to vector<2x1x32xf32>
    %224 = vector.shape_cast %223 : vector<2x1x32xf32> to vector<2x32xf32>
    %c0_71 = arith.constant 0 : index
    %c288 = arith.constant 288 : index
    %225 = vector.load %arg7[%c0_71, %c288] : memref<2x512xf32, #tpu.memory_space<vmem>>, vector<2x32xf32>
    tpu.vector_store %arg7[%c0_71, %c288], %224 {strides = array<i32>} : memref<2x512xf32, #tpu.memory_space<vmem>>, vector<2x32xf32>,
    %226 = vector.extract_strided_slice %195 {offsets = [0, 10, 0], sizes = [2, 1, 32], strides = [1, 1, 1]} : vector<2x16x32xf32> to vector<2x1x32xf32>
    %227 = vector.shape_cast %226 : vector<2x1x32xf32> to vector<2x32xf32>
    %c0_72 = arith.constant 0 : index
    %c320 = arith.constant 320 : index
    %228 = vector.load %arg7[%c0_72, %c320] : memref<2x512xf32, #tpu.memory_space<vmem>>, vector<2x32xf32>
    tpu.vector_store %arg7[%c0_72, %c320], %227 {strides = array<i32>} : memref<2x512xf32, #tpu.memory_space<vmem>>, vector<2x32xf32>,
    %229 = vector.extract_strided_slice %195 {offsets = [0, 11, 0], sizes = [2, 1, 32], strides = [1, 1, 1]} : vector<2x16x32xf32> to vector<2x1x32xf32>
    %230 = vector.shape_cast %229 : vector<2x1x32xf32> to vector<2x32xf32>
    %c0_73 = arith.constant 0 : index
    %c352 = arith.constant 352 : index
    %231 = vector.load %arg7[%c0_73, %c352] : memref<2x512xf32, #tpu.memory_space<vmem>>, vector<2x32xf32>
    tpu.vector_store %arg7[%c0_73, %c352], %230 {strides = array<i32>} : memref<2x512xf32, #tpu.memory_space<vmem>>, vector<2x32xf32>,
    %232 = vector.extract_strided_slice %195 {offsets = [0, 12, 0], sizes = [2, 1, 32], strides = [1, 1, 1]} : vector<2x16x32xf32> to vector<2x1x32xf32>
    %233 = vector.shape_cast %232 : vector<2x1x32xf32> to vector<2x32xf32>
    %c0_74 = arith.constant 0 : index
    %c384 = arith.constant 384 : index
    %234 = vector.load %arg7[%c0_74, %c384] : memref<2x512xf32, #tpu.memory_space<vmem>>, vector<2x32xf32>
    tpu.vector_store %arg7[%c0_74, %c384], %233 {strides = array<i32>} : memref<2x512xf32, #tpu.memory_space<vmem>>, vector<2x32xf32>,
    %235 = vector.extract_strided_slice %195 {offsets = [0, 13, 0], sizes = [2, 1, 32], strides = [1, 1, 1]} : vector<2x16x32xf32> to vector<2x1x32xf32>
    %236 = vector.shape_cast %235 : vector<2x1x32xf32> to vector<2x32xf32>
    %c0_75 = arith.constant 0 : index
    %c416 = arith.constant 416 : index
    %237 = vector.load %arg7[%c0_75, %c416] : memref<2x512xf32, #tpu.memory_space<vmem>>, vector<2x32xf32>
    tpu.vector_store %arg7[%c0_75, %c416], %236 {strides = array<i32>} : memref<2x512xf32, #tpu.memory_space<vmem>>, vector<2x32xf32>,
    %238 = vector.extract_strided_slice %195 {offsets = [0, 14, 0], sizes = [2, 1, 32], strides = [1, 1, 1]} : vector<2x16x32xf32> to vector<2x1x32xf32>
    %239 = vector.shape_cast %238 : vector<2x1x32xf32> to vector<2x32xf32>
    %c0_76 = arith.constant 0 : index
    %c448 = arith.constant 448 : index
    %240 = vector.load %arg7[%c0_76, %c448] : memref<2x512xf32, #tpu.memory_space<vmem>>, vector<2x32xf32>
    tpu.vector_store %arg7[%c0_76, %c448], %239 {strides = array<i32>} : memref<2x512xf32, #tpu.memory_space<vmem>>, vector<2x32xf32>,
    %241 = vector.extract_strided_slice %195 {offsets = [0, 15, 0], sizes = [2, 1, 32], strides = [1, 1, 1]} : vector<2x16x32xf32> to vector<2x1x32xf32>
    %242 = vector.shape_cast %241 : vector<2x1x32xf32> to vector<2x32xf32>
    %c0_77 = arith.constant 0 : index
    %c480 = arith.constant 480 : index
    %243 = vector.load %arg7[%c0_77, %c480] : memref<2x512xf32, #tpu.memory_space<vmem>>, vector<2x32xf32>
    tpu.vector_store %arg7[%c0_77, %c480], %242 {strides = array<i32>} : memref<2x512xf32, #tpu.memory_space<vmem>>, vector<2x32xf32>,
    return
  }
  func.func @transform_0(%arg0: i32) -> (i32, i32, i32) {
    %c0_i32 = arith.constant 0 : i32
    %c0_i32_0 = arith.constant 0 : i32
    %c0_i32_1 = arith.constant 0 : i32
    return %arg0, %c0_i32, %c0_i32_0 : i32, i32, i32
  }
  func.func @transform_1(%arg0: i32) -> (i32, i32) {
    %c0_i32 = arith.constant 0 : i32
    %c0_i32_0 = arith.constant 0 : i32
    %c0_i32_1 = arith.constant 0 : i32
    return %c0_i32, %c0_i32_0 : i32, i32
  }
  func.func @transform_2(%arg0: i32) -> i32 {
    %c0_i32 = arith.constant 0 : i32
    %c0_i32_0 = arith.constant 0 : i32
    return %c0_i32 : i32
  }
  func.func @transform_3(%arg0: i32) -> (i32, i32, i32) {
    %c0_i32 = arith.constant 0 : i32
    %c0_i32_0 = arith.constant 0 : i32
    %c0_i32_1 = arith.constant 0 : i32
    %c0_i32_2 = arith.constant 0 : i32
    return %c0_i32, %c0_i32_0, %c0_i32_1 : i32, i32, i32
  }
  func.func @transform_4(%arg0: i32) -> (i32, i32) {
    %c0_i32 = arith.constant 0 : i32
    %c0_i32_0 = arith.constant 0 : i32
    %c0_i32_1 = arith.constant 0 : i32
    return %c0_i32, %c0_i32_0 : i32, i32
  }
  func.func @transform_5(%arg0: i32) -> (i32, i32) {
    %c0_i32 = arith.constant 0 : i32
    %c0_i32_0 = arith.constant 0 : i32
    %c0_i32_1 = arith.constant 0 : i32
    return %c0_i32, %c0_i32_0 : i32, i32
  }
  func.func @transform_6(%arg0: i32) -> (i32, i32) {
    %c0_i32 = arith.constant 0 : i32
    %c0_i32_0 = arith.constant 0 : i32
    return %arg0, %c0_i32 : i32, i32
  }
}

</mosaic_0001>

<bundles_post_ra>
// kernel: tpu_custom_call.1
= control target key start
LH: loop header
LB: loop body
LE: loop exit
PB: predicated region body
PF: predicated region fallthrough
CT: control target
= control target key end

     0   :  { %11 = vsyncpa [#allocation4], 0  ;;  %s3251_s0 = inlined_call_operand.hbm [shape: bf16[2,16,32], index: 0, kind: input, shape index: {}]   ;;  %s3252_s1 = inlined_call_operand.hbm [shape: bf16[32,96], index: 1, kind: input, shape index: {}]   ;;  %s3253_s2 = inlined_call_operand.vmem [shape: f32[4], index: 2, kind: input, shape index: {}]   ;;  %s3254_s3 = inlined_call_operand.hbm [shape: f32[4,16,16], index: 3, kind: input, shape index: {}]   ;;  %s3255_s4 = inlined_call_operand.hbm [shape: bf16[32,32], index: 4, kind: input, shape index: {}]   ;;  %s3256_s5 = inlined_call_operand.vmem [shape: f32[1,32], index: 5, kind: input, shape index: {}]   ;;  %s3257_s6 = inlined_call_operand.hbm [shape: f32[2,512], index: 6, kind: output, shape index: {}]  }
   0x1   :  { %12 = vsyncpa [#allocation8], 0 }
   0x2   :  { %13 = vsyncpa [#allocation6], 0 }
   0x3   :  { %14 = vsyncpa [#allocation12], 0 }
   0x4   :  { %15 = vsyncpa [#allocation5], 0  ;;  %s33_s23 = sshll.u32 %s3252_s1, 4  ;;  %s2273_s24 = smov [#allocation7]   ;;  %s34_s23 = int_to_ptr.hbm [resolvable:$true] %s33_s23 }
   0x5   :  { %s35_s25 = sshll.u32 %s2273_s24, 4  ;;  %s20_s28 = sshll.u32 %s3251_s0, 4  ;;  %s36_s25 = int_to_ptr.vmem [resolvable:$true] %s35_s25  ;;  %s21_s28 = int_to_ptr.hbm [resolvable:$true] %s20_s28 }
   0x6   :  { %s2274_s29 = smov 64   ;;  %s2275_s30 = smov 4  }
   0x7   :  { %41 = dma.hbm_to_vmem [thread:$0]  %s34_s23, 256, %s36_s25, [#allocation8], %s2274_s29, %s2274_s29, %s2275_s30  }
   0x8   :  { %s2276_s7 = smov [#allocation3]   ;;  %s47_s1 = sshll.u32 %s3253_s2, 4  ;;  %s48_s1 = int_to_ptr.vmem [resolvable:$true] %s47_s1 }
   0x9   :  { %s22_s8 = sshll.u32 %s2276_s7, 4  ;;  %s55_s0 = sshll.u32 %s3254_s3, 4  ;;  %s23_s8 = int_to_ptr.vmem [resolvable:$true] %s22_s8  ;;  %s56_s0 = int_to_ptr.hbm [resolvable:$true] %s55_s0 }
   0xa   :  { %28 = dma.hbm_to_vmem [thread:$0]  %s21_s28, 256, %s23_s8, [#allocation4], %s2274_s29, %s2274_s29, %s2275_s30  }
   0xb   :  { %s2277_s13 = smov [#allocation9]   ;;  %s2278_s14 = smov [#allocation10]  }
   0xc   :  { %50 = dma.vmem_to_smem %s48_s1, 16, %s2277_s13, [#allocation6]  }
   0xd   :  { %s57_s15 = sshll.u32 %s2278_s14, 4  ;;  %s2279_s16 = smov 128   ;;  %s58_s15 = int_to_ptr.vmem [resolvable:$true] %s57_s15 }
   0xe   :  { %s2280_s17 = smov 8   ;;  %s68_s19 = sshll.u32 %s3255_s4, 4  ;;  %s69_s19 = int_to_ptr.hbm [resolvable:$true] %s68_s19 }
   0xf   :  { %63 = dma.hbm_to_vmem [thread:$0]  %s56_s0, 1024, %s58_s15, [#allocation8], %s2279_s16, %s2279_s16, %s2280_s17  }
  0x10   :  { %s2281_s20 = smov [#allocation11]  }
  0x11   :  { %s70_s21 = sshll.u32 %s2281_s20, 4  ;;  %s71_s21 = int_to_ptr.vmem [resolvable:$true] %s70_s21 }
  0x12   :  { %76 = dma.hbm_to_vmem [thread:$0]  %s69_s19, 256, %s71_s21, [#allocation12], %s2274_s29, %s2274_s29, %s2275_s30  }
  0x13   :  { %2261 = dma.done.wait [#allocation4], 256  }
  0x14   :  { %2262 = vsyncadd [#allocation4], 4294967040 }
  0x15   :  { %2263 = dma.done.wait [#allocation8], 256  }
  0x16   :  { %2264 = vsyncadd [#allocation8], 4294967040 }
  0x17   :  { %2265 = dma.done.wait [#allocation6], 16  }
  0x18   :  { %2266 = vsyncadd [#allocation6], 4294967280 }
  0x19   :  { %2267 = dma.done.wait [#allocation8], 1024  }
  0x1a   :  { %2268 = vsyncadd [#allocation8], 4294966272 }
  0x1b   :  { %2269 = dma.done.wait [#allocation12], 256  }
  0x1c   :  { %2270 = vsyncadd [#allocation12], 4294967040 }
  0x1d   :  { %99 = sfence }
  0x1e   :  { %v1974_v0 = vld [vmem:[#allocation7 + $0x8] sm:$0xff]  ;;  %v1973_v1 = vld [vmem:[#allocation7] sm:$0xff]  ;;  %v1971_v2 = vld [vmem:[#allocation3] sm:$0xff]  ;;  %vm131_vm0 = vcmask 261120   ;;  %s2282_s3 = smov 112   ;;  %s2283_s4 = smov 120  }
  0x1f   :  { %144 = vmatpush.bf16.msra.mxu0 %v1974_v0  ;;  %v1972_v3 = vld [vmem:[#allocation3 + $0x8] sm:$0xff]  ;;  %s2284_s22 = smov 96   ;;  %s2285_s23 = smov 72   ;;  %vm161_vm1 = vcmask 64512  }
  0x20   :  { %s2286_s24 = smov 88   ;;  %s2287_s25 = smov 104  }
  0x21   :  { %s2288_s26 = smov 80   ;;  %s1928_s27 = sld [smem:[#allocation9 + $0x1]] }
  0x22   :  { %s1939_s28 = sld [smem:[#allocation9 + $0x2]]  ;;  %s2289_s8 = smov 56  }
  0x23   :  { %145 = vmatpush.bf16.msra.mxu0 %v1973_v1  ;;  %s2733_s30 = sld [smem:[#allocation9]]  ;;  %s2290_s9 = smov 48  }
  0x24   :  { %s2767_s7 = sld [smem:[#allocation9 + $0x3]]  ;;  %s2291_s10 = smov 40  }
  0x25   :  { %s2292_s1 = smov 16   ;;  %s2293_s11 = smov 24  }
  0x26   :  { %1916 = vmatmul.msk.bf16.vlgmr.msra.gmra.mxu0 %vm131_vm0, %v1971_v2  ;;  %s1887_s16 = sshll.u32 %s3257_s6, 4  ;;  %s1888_s16 = int_to_ptr.hbm [resolvable:$true] %s1887_s16 }
  0x36   :  { %1917 = vmatmul.msk.bf16.gmra.mxu0 %vm131_vm0, %v1972_v3 }
  0xa3   :  { %v2355_v4 = vpop.f32.mrf.mxu0 }
  0xa4   :  { %v157_v5 = vmul.f32 %v2355_v4, %v2355_v4 }
  0xa6   :  { %859 = vrot.lane.b32.xlu2 %v157_v5, %s2282_s3  ;;  %501 = vrot.lane.b32.xlu1 %v157_v5, %s2283_s4  ;;  %v162_v12 = vsel %vm161_vm1, %v157_v5, 0.0 }
  0xa7   :  { %226 = vrot.lane.b32.xlu0 %v157_v5, %s2284_s22 }
  0xab   :  { %v2362_v6 = vpop.f32.mrf.mxu0 }
  0xac   :  { %v158_v7 = vmul.f32 %v2362_v6, %v2362_v6 }
  0xae   :  { %1289 = vrot.lane.b32.xlu1 %v157_v5, %s2285_s23  ;;  %575 = vrot.lane.b32.xlu2 %v158_v7, %s2286_s24  ;;  %v165_v19 = vsel %vm161_vm1, %v158_v7, 0.0 }
  0xaf   :  { %573 = vrot.lane.b32.xlu0 %v157_v5, %s2286_s24 }
  0xb3   :  { %v2372_v8 = vpop.f32.mrf.mxu0 }
  0xb4   :  { %v159_v9 = vmul.f32 %v2372_v8, %v2372_v8 }
  0xb6   :  { %1217 = vrot.lane.b32.xlu1 %v157_v5, %s2287_s25  ;;  %1291 = vrot.lane.b32.xlu2 %v158_v7, %s2285_s23  ;;  %v168_v21 = vsel %vm161_vm1, %v159_v9, 0.0 }
  0xb7   :  { %931 = vrot.lane.b32.xlu0 %v157_v5, %s2288_s26 }
  0xbb   :  { %v2384_v10 = vpop.f32.mrf.mxu0 }
  0xbc   :  { %v2388_v11 = vmul.f32 %v2384_v10, %v2384_v10 }
  0xbe   :  { %503 = vrot.lane.b32.xlu1 %v158_v7, %s2283_s4  ;;  %577 = vrot.lane.b32.xlu2 %v159_v9, %s2286_s24  ;;  %v171_v62 = vsel %vm161_vm1, %v2388_v11, 0.0 }
  0xc6   :  { %933 = vrot.lane.b32.xlu1 %v158_v7, %s2288_s26  ;;  %505 = vrot.lane.b32.xlu2 %v159_v9, %s2283_s4 }
  0xce   :  { %861 = vrot.lane.b32.xlu1 %v158_v7, %s2282_s3  ;;  %935 = vrot.lane.b32.xlu2 %v159_v9, %s2288_s26 }
  0xd6   :  { %230 = vrot.lane.b32.xlu1 %v159_v9, %s2284_s22  ;;  %863 = vrot.lane.b32.xlu2 %v159_v9, %s2282_s3 }
  0xde   :  { %1293 = vrot.lane.b32.xlu1 %v159_v9, %s2285_s23  ;;  %507 = vrot.lane.b32.xlu2 %v2388_v11, %s2283_s4 }
  0xe1   :  { %163 = vadd.xlane.f32.xlu0 %v162_v12 }
  0xe6   :  { %1221 = vrot.lane.b32.xlu1 %v159_v9, %s2287_s25  ;;  %937 = vrot.lane.b32.xlu2 %v2388_v11, %s2288_s26 }
  0xee   :  { %232 = vrot.lane.b32.xlu1 %v2388_v11, %s2284_s22  ;;  %1295 = vrot.lane.b32.xlu2 %v2388_v11, %s2285_s23 }
  0xf5   :  { %228 = vrot.lane.b32.xlu0 %v158_v7, %s2284_s22 }
  0xf6   :  { %579 = vrot.lane.b32.xlu1 %v2388_v11, %s2286_s24  ;;  %1223 = vrot.lane.b32.xlu2 %v2388_v11, %s2287_s25 }
  0xfd   :  { %1219 = vrot.lane.b32.xlu0 %v158_v7, %s2287_s25 }
 0x100   :  { %v860_v24 = vpop.permute.xlu2 %859 }
 0x101   :  { %v871_v49 = vsel %vm161_vm1, %v860_v24, 0.0 }
 0x108   :  { %v576_v26 = vpop.permute.xlu2 %575 }
 0x109   :  { %v588_v53 = vsel %vm161_vm1, %v576_v26, 0.0 }
 0x110   :  { %v1292_v28 = vpop.permute.xlu2 %1291 }
 0x111   :  { %v1304_v48 = vsel %vm161_vm1, %v1292_v28, 0.0 }
 0x118   :  { %v502_v13 = vpop.permute.xlu1 %501  ;;  %v578_v30 = vpop.permute.xlu2 %577 }
 0x119   :  { %v227_v14 = vpop.permute.xlu0 %226  ;;  %v513_v15 = vsel %vm161_vm1, %v502_v13, 0.0  ;;  %v591_v60 = vsel %vm161_vm1, %v578_v30, 0.0 }
 0x11a   :  { %v238_v42 = vsel %vm161_vm1, %v227_v14, 0.0 }
 0x120   :  { %v1290_v16 = vpop.permute.xlu1 %1289  ;;  %514 = vadd.xlane.f32.xlu1 %v513_v15  ;;  %v506_v34 = vpop.permute.xlu2 %505 }
 0x121   :  { %v574_v17 = vpop.permute.xlu0 %573  ;;  %v519_v47 = vsel %vm161_vm1, %v506_v34, 0.0  ;;  %v1301_v57 = vsel %vm161_vm1, %v1290_v16, 0.0 }
 0x122   :  { %v585_v18 = vsel %vm161_vm1, %v574_v17, 0.0 }
 0x123   :  { %586 = vadd.xlane.f32.xlu2 %v585_v18 }
 0x127   :  { %166 = vadd.xlane.f32.xlu0 %v165_v19 }
 0x128   :  { %v2410_v20 = vpop.permute.xlu1 %1217  ;;  %v936_v40 = vpop.permute.xlu2 %935 }
 0x129   :  { %v932_v31 = vpop.permute.xlu0 %931  ;;  %v949_v0 = vsel %vm161_vm1, %v936_v40, 0.0  ;;  %v1229_v2 = vsel %vm161_vm1, %v2410_v20, 0.0 }
 0x12a   :  { %v943_v46 = vsel %vm161_vm1, %v932_v31, 0.0 }
 0x12f   :  { %169 = vadd.xlane.f32.xlu0 %v168_v21 }
 0x130   :  { %v504_v22 = vpop.permute.xlu1 %503  ;;  %v864_v45 = vpop.permute.xlu2 %863 }
 0x131   :  { %v516_v43 = vsel %vm161_vm1, %v504_v22, 0.0  ;;  %v877_v52 = vsel %vm161_vm1, %v864_v45, 0.0 }
 0x138   :  { %v934_v23 = vpop.permute.xlu1 %933  ;;  %v508_v50 = vpop.permute.xlu2 %507 }
 0x139   :  { %v522_v51 = vsel %vm161_vm1, %v508_v50, 0.0  ;;  %v946_v56 = vsel %vm161_vm1, %v934_v23, 0.0 }
 0x140   :  { %v862_v25 = vpop.permute.xlu1 %861  ;;  %v938_v54 = vpop.permute.xlu2 %937 }
 0x141   :  { %v874_v44 = vsel %vm161_vm1, %v862_v25, 0.0  ;;  %v952_v55 = vsel %vm161_vm1, %v938_v54, 0.0 }
 0x143   :  { %865 = vrot.lane.b32.xlu0 %v2388_v11, %s2282_s3 }
 0x148   :  { %v231_v27 = vpop.permute.xlu1 %230  ;;  %v1296_v7 = vpop.permute.xlu2 %1295 }
 0x149   :  { %v244_v58 = vsel %vm161_vm1, %v231_v27, 0.0  ;;  %v1310_v14 = vsel %vm161_vm1, %v1296_v7, 0.0 }
 0x150   :  { %v1294_v29 = vpop.permute.xlu1 %1293  ;;  %v2449_v13 = vpop.permute.xlu2 %1223 }
 0x151   :  { %v1307_v59 = vsel %vm161_vm1, %v1294_v29, 0.0 }
 0x154   :  { %v2417_v33 = vpop.xlane.xlu0 %163 }
 0x158   :  { %v2415_v32 = vpop.permute.xlu1 %1221 }
 0x160   :  { %v233_v35 = vpop.permute.xlu1 %232 }
 0x161   :  { %v247_v36 = vsel %vm161_vm1, %v233_v35, 0.0 }
 0x162   :  { %248 = vadd.xlane.f32.xlu1 %v247_v36 }
 0x167   :  { %v229_v37 = vpop.permute.xlu0 %228 }
 0x168   :  { %v241_v38 = vsel %vm161_vm1, %v229_v37, 0.0  ;;  %v580_v39 = vpop.permute.xlu1 %579 }
 0x169   :  { %242 = vadd.xlane.f32.xlu2 %v241_v38  ;;  %v594_v41 = vsel %vm161_vm1, %v580_v39, 0.0 }
 0x16a   :  { %595 = vadd.xlane.f32.xlu1 %v594_v41 }
 0x16d   :  { %239 = vadd.xlane.f32.xlu0 %v238_v42 }
 0x16f   :  { %v1220_v61 = vpop.permute.xlu0 %1219 }
 0x170   :  { %v1232_v9 = vsel %vm161_vm1, %v1220_v61, 0.0 }
 0x171   :  { %517 = vadd.xlane.f32.xlu2 %v516_v43 }
 0x172   :  { %875 = vadd.xlane.f32.xlu1 %v874_v44 }
 0x175   :  { %944 = vadd.xlane.f32.xlu0 %v943_v46 }
 0x179   :  { %520 = vadd.xlane.f32.xlu2 %v519_v47 }
 0x17a   :  { %1305 = vadd.xlane.f32.xlu1 %v1304_v48 }
 0x17d   :  { %872 = vadd.xlane.f32.xlu0 %v871_v49 }
 0x181   :  { %523 = vadd.xlane.f32.xlu2 %v522_v51 }
 0x182   :  { %878 = vadd.xlane.f32.xlu1 %v877_v52 }
 0x185   :  { %589 = vadd.xlane.f32.xlu0 %v588_v53 }
 0x189   :  { %953 = vadd.xlane.f32.xlu2 %v952_v55  ;;  %v2461_v55 = vstv %s1928_s27 }
 0x18d   :  { %947 = vadd.xlane.f32.xlu0 %v946_v56 }
 0x191   :  { %1302 = vadd.xlane.f32.xlu2 %v1301_v57 }
 0x193   :  { %v515_v11 = vpop.xlane.xlu1 %514 }
 0x194   :  { %v525_v12 = vmax.f32 %v515_v11, 1e-24 }
 0x195   :  { %245 = vadd.xlane.f32.xlu0 %v244_v58 }
 0x196   :  { %2001 = vrsqrt.f32 %v525_v12  ;;  %v2452_v15 = vpop.xlane.xlu2 %586  ;;  %vm535_vm6 = vweird.f32 %v525_v12 }
 0x199   :  { %1308 = vadd.xlane.f32.xlu2 %v1307_v59 }
 0x19a   :  { %v2440_v63 = vpop.xlane.xlu0 %166 }
 0x19c   :  { %v2002_v16 = vpop.eup %2001 }
 0x19d   :  { %592 = vadd.xlane.f32.xlu0 %v591_v60  ;;  %v530_v19 = vmul.f32 %v2002_v16, %v525_v12  ;;  %vm536_vm5 = vweird.f32 %v2002_v16 }
 0x19e   :  { %vm537_vm7 = vmor %vm535_vm6, %vm536_vm5 }
 0x19f   :  { %v531_v20 = vmul.f32 %v2002_v16, %v530_v19 }
 0x1a1   :  { %v532_v25 = vmul.f32 0.5, %v531_v20 }
 0x1a2   :  { %v2443_v1 = vpop.xlane.xlu0 %169 }
 0x1a3   :  { %v533_v30 = vsub.f32 1.5, %v532_v25 }
 0x1a5   :  { %172 = vadd.xlane.f32.xlu0 %v171_v62  ;;  %v534_v37 = vmul.f32 %v2002_v16, %v533_v30 }
 0x1a7   :  { %v538_v49 = vsel %vm537_vm7, %v2002_v16, %v534_v37 }
 0x1a8   :  { %v569_v52 = vmul.f32 %v538_v49, %v2355_v4 }
 0x1aa   :  { %v647_v62 = vmul.f32 %v2461_v55, %v569_v52 }
 0x1ad   :  { %950 = vadd.xlane.f32.xlu0 %v949_v0 }
 0x1b5   :  { %1230 = vadd.xlane.f32.xlu0 %v1229_v2  ;;  %v866_v3 = vpop.permute.xlu0 %865 }
 0x1b6   :  { %v880_v5 = vsel %vm161_vm1, %v866_v3, 0.0 }
 0x1bd   :  { %881 = vadd.xlane.f32.xlu0 %v880_v5 }
 0x1c5   :  { %1233 = vadd.xlane.f32.xlu0 %v1232_v9 }
 0x1cd   :  { %1311 = vadd.xlane.f32.xlu0 %v1310_v14 }
 0x1d5   :  { %v249_v17 = vpop.xlane.xlu1 %248 }
 0x1d6   :  { %v253_v18 = vmax.f32 %v249_v17, 1e-24 }
 0x1d8   :  { %2003 = vrsqrt.f32 %v253_v18  ;;  %vm290_vm2 = vweird.f32 %v253_v18 }
 0x1dc   :  { %v243_v21 = vpop.xlane.xlu2 %242 }
 0x1dd   :  { %v251_v22 = vmax.f32 %v243_v21, 1e-24 }
 0x1de   :  { %v2004_v23 = vpop.eup %2003 }
 0x1df   :  { %v285_v24 = vmul.f32 %v2004_v23, %v253_v18  ;;  %2005 = vrsqrt.f32 %v251_v22  ;;  %vm291_vm3 = vweird.f32 %v2004_v23  ;;  %vm270_vm10 = vweird.f32 %v251_v22 }
 0x1e0   :  { %v240_v26 = vpop.xlane.xlu0 %239  ;;  %vm292_vm4 = vmor %vm290_vm2, %vm291_vm3 }
 0x1e1   :  { %v286_v27 = vmul.f32 %v2004_v23, %v285_v24  ;;  %v250_v28 = vmax.f32 %v240_v26, 1e-24 }
 0x1e3   :  { %v287_v29 = vmul.f32 0.5, %v286_v27  ;;  %2007 = vrsqrt.f32 %v250_v28  ;;  %vm260_vm12 = vweird.f32 %v250_v28 }
 0x1e4   :  { %v2454_v31 = vpop.xlane.xlu2 %517 }
 0x1e5   :  { %v2006_v34 = vpop.eup %2005  ;;  %v288_v35 = vsub.f32 1.5, %v287_v29 }
 0x1e6   :  { %v265_v36 = vmul.f32 %v2006_v34, %v251_v22  ;;  %vm271_vm8 = vweird.f32 %v2006_v34 }
 0x1e7   :  { %v289_v40 = vmul.f32 %v2004_v23, %v288_v35  ;;  %vm272_vm11 = vmor %vm270_vm10, %vm271_vm8 }
 0x1e8   :  { %v266_v38 = vmul.f32 %v2006_v34, %v265_v36  ;;  %v945_v39 = vpop.xlane.xlu0 %944  ;;  %v2476_v36 = vstv %s1939_s28 }
 0x1e9   :  { %v2008_v41 = vpop.eup %2007  ;;  %v955_v42 = vmax.f32 %v945_v39, 1e-24  ;;  %v293_v45 = vsel %vm292_vm4, %v2004_v23, %v289_v40 }
 0x1ea   :  { %v267_v43 = vmul.f32 0.5, %v266_v38  ;;  %v255_v44 = vmul.f32 %v2008_v41, %v250_v28  ;;  %v297_v46 = vmul.f32 %v293_v45, %v2384_v10  ;;  %vm261_vm9 = vweird.f32 %v2008_v41 }
 0x1eb   :  { %2009 = vrsqrt.f32 %v955_v42  ;;  %vm262_vm13 = vmor %vm260_vm12, %vm261_vm9  ;;  %vm965_vm15 = vweird.f32 %v955_v42 }
 0x1ec   :  { %v256_v47 = vmul.f32 %v2008_v41, %v255_v44  ;;  %v2457_v48 = vpop.xlane.xlu2 %520  ;;  %v268_v50 = vsub.f32 1.5, %v267_v43  ;;  %353 = vrot.lane.b32.xlu2 %v297_v46, %s2284_s22 }
 0x1ee   :  { %v257_v51 = vmul.f32 0.5, %v256_v47  ;;  %v269_v58 = vmul.f32 %v2006_v34, %v268_v50 }
 0x1f0   :  { %v258_v53 = vsub.f32 1.5, %v257_v51  ;;  %v873_v54 = vpop.xlane.xlu0 %872  ;;  %v273_v61 = vsel %vm272_vm11, %v2006_v34, %v269_v58 }
 0x1f1   :  { %v2010_v56 = vpop.eup %2009  ;;  %v883_v57 = vmax.f32 %v873_v54, 1e-24  ;;  %v295_v2 = vmul.f32 %v273_v61, %v2362_v6 }
 0x1f2   :  { %v960_v59 = vmul.f32 %v2010_v56, %v955_v42  ;;  %v259_v60 = vmul.f32 %v2008_v41, %v258_v53  ;;  %vm966_vm14 = vweird.f32 %v2010_v56 }
 0x1f3   :  { %2011 = vrsqrt.f32 %v883_v57  ;;  %314 = vrot.lane.b32.xlu1 %v295_v2, %s2284_s22  ;;  %vm967_vm2 = vmor %vm965_vm15, %vm966_vm14  ;;  %vm893_vm4 = vweird.f32 %v883_v57 }
 0x1f4   :  { %v961_v0 = vmul.f32 %v2010_v56, %v960_v59  ;;  %v2465_v3 = vpop.xlane.xlu2 %523  ;;  %v263_v5 = vsel %vm262_vm13, %v2008_v41, %v259_v60  ;;  %656 = vrot.lane.b32.xlu2 %v647_v62, %s2283_s4  ;;  %v2483_v60 = vmax.f32 %v2452_v15, 1e-24 }
 0x1f5   :  { %v294_v7 = vmul.f32 %v263_v5, %v2355_v4 }
 0x1f6   :  { %v962_v9 = vmul.f32 0.5, %v961_v0 }
 0x1f7   :  { %312 = vrot.lane.b32.xlu0 %v294_v7, %s2284_s22 }
 0x1f8   :  { %v963_v11 = vsub.f32 1.5, %v962_v9  ;;  %v590_v12 = vpop.xlane.xlu0 %589  ;;  %v2490_v9 = vmax.f32 %v2454_v31, 1e-24 }
 0x1f9   :  { %v2012_v14 = vpop.eup %2011  ;;  %v598_v46 = vmax.f32 %v590_v12, 1e-24 }
 0x1fa   :  { %v888_v16 = vmul.f32 %v2012_v14, %v883_v57  ;;  %v964_v19 = vmul.f32 %v2010_v56, %v963_v11  ;;  %vm894_vm3 = vweird.f32 %v2012_v14 }
 0x1fb   :  { %vm895_vm5 = vmor %vm893_vm4, %vm894_vm3 }
 0x1fc   :  { %v889_v17 = vmul.f32 %v2012_v14, %v888_v16  ;;  %v954_v18 = vpop.xlane.xlu2 %953  ;;  %v968_v22 = vsel %vm967_vm2, %v2010_v56, %v964_v19  ;;  %vm617_vm2 = vweird.f32 %v598_v46 }
 0x1fd   :  { %v958_v20 = vmax.f32 %v954_v18, 1e-24  ;;  %v999_v24 = vmul.f32 %v968_v22, %v2355_v4 }
 0x1fe   :  { %v890_v21 = vmul.f32 0.5, %v889_v17  ;;  %v1235_v17 = vsel %vm161_vm1, %v2415_v32, 0.0 }
 0x1ff   :  { %2013 = vrsqrt.f32 %v958_v20  ;;  %1020 = vrot.lane.b32.xlu2 %v999_v24, %s2288_s26  ;;  %vm995_vm7 = vweird.f32 %v958_v20 }
 0x200   :  { %v891_v23 = vsub.f32 1.5, %v890_v21  ;;  %v2472_v25 = vpop.xlane.xlu0 %947 }
 0x201   :  { %v2504_v21 = vmax.f32 %v2472_v25, 1e-24 }
 0x202   :  { %v892_v26 = vmul.f32 %v2012_v14, %v891_v23 }
 0x204   :  { %v1303_v27 = vpop.xlane.xlu2 %1302  ;;  %v896_v28 = vsel %vm895_vm5, %v2012_v14, %v892_v26  ;;  %vm607_vm5 = vweird.f32 %v2483_v60 }
 0x205   :  { %v2014_v29 = vpop.eup %2013  ;;  %v1313_v30 = vmax.f32 %v1303_v27, 1e-24  ;;  %v927_v34 = vmul.f32 %v896_v28, %v2355_v4 }
 0x206   :  { %v990_v35 = vmul.f32 %v2014_v29, %v958_v20  ;;  %vm996_vm6 = vweird.f32 %v2014_v29 }
 0x207   :  { %2015 = vrsqrt.f32 %v1313_v30  ;;  %v1005_v37 = vmul.f32 %v2476_v36, %v927_v34  ;;  %vm997_vm8 = vmor %vm995_vm7, %vm996_vm6  ;;  %vm1323_vm10 = vweird.f32 %v1313_v30 }
 0x208   :  { %v991_v38 = vmul.f32 %v2014_v29, %v990_v35  ;;  %v246_v39 = vpop.xlane.xlu0 %245 }
 0x209   :  { %v252_v40 = vmax.f32 %v246_v39, 1e-24  ;;  %1014 = vrot.lane.b32.xlu2 %v1005_v37, %s2282_s3 }
 0x20a   :  { %v992_v41 = vmul.f32 0.5, %v991_v38 }
 0x20b   :  { %2017 = vrsqrt.f32 %v252_v40  ;;  %vm280_vm13 = vweird.f32 %v252_v40 }
 0x20c   :  { %v993_v42 = vsub.f32 1.5, %v992_v41  ;;  %2019 = vrsqrt.f32 %v598_v46  ;;  %v1309_v26 = vpop.xlane.xlu2 %1308 }
 0x20d   :  { %v2016_v43 = vpop.eup %2015  ;;  %2021 = vrsqrt.f32 %v2483_v60  ;;  %v2511_v32 = vmax.f32 %v1309_v26, 1e-24 }
 0x20e   :  { %v1318_v44 = vmul.f32 %v2016_v43, %v1313_v30  ;;  %v994_v45 = vmul.f32 %v2014_v29, %v993_v42  ;;  %vm1324_vm9 = vweird.f32 %v2016_v43  ;;  %2023 = vrsqrt.f32 %v2490_v9 }
 0x20f   :  { %vm1325_vm11 = vmor %vm1323_vm10, %vm1324_vm9  ;;  %2025 = vrsqrt.f32 %v2504_v21  ;;  %v2520_v42 = vmax.f32 %v2457_v48, 1e-24 }
 0x210   :  { %v1319_v47 = vmul.f32 %v2016_v43, %v1318_v44  ;;  %v593_v49 = vpop.xlane.xlu0 %592  ;;  %v998_v50 = vsel %vm997_vm8, %v2014_v29, %v994_v45  ;;  %v596_v29 = vpop.xlane.xlu1 %595  ;;  %2027 = vrsqrt.f32 %v2511_v32  ;;  %vm545_vm8 = vweird.f32 %v2490_v9 }
 0x211   :  { %v2018_v51 = vpop.eup %2017  ;;  %v1002_v52 = vmul.f32 %v998_v50, %v2384_v10  ;;  %v2514_v25 = vmax.f32 %v593_v49, 1e-24 }
 0x212   :  { %v1320_v53 = vmul.f32 0.5, %v1319_v47  ;;  %v275_v54 = vmul.f32 %v2018_v51, %v252_v40  ;;  %vm281_vm12 = vweird.f32 %v2018_v51  ;;  %v2020_v2 = vpop.eup %2019 }
 0x213   :  { %1065 = vrot.lane.b32.xlu2 %v1002_v52, %s2288_s26  ;;  %vm282_vm14 = vmor %vm280_vm13, %vm281_vm12  ;;  %v612_v15 = vmul.f32 %v2020_v2, %v598_v46  ;;  %v2022_v18 = vpop.eup %2021  ;;  %vm618_vm15 = vweird.f32 %v2020_v2  ;;  %2029 = vrsqrt.f32 %v2514_v25 }
 0x214   :  { %v1321_v56 = vsub.f32 1.5, %v1320_v53  ;;  %v276_v57 = vmul.f32 %v2018_v51, %v275_v54  ;;  %v602_v31 = vmul.f32 %v2022_v18, %v2483_v60  ;;  %v2501_v20 = vpop.eup %2023  ;;  %vm619_vm3 = vmor %vm617_vm2, %vm618_vm15  ;;  %vm608_vm4 = vweird.f32 %v2022_v18 }
 0x215   :  { %v613_v14 = vmul.f32 %v2020_v2, %v612_v15  ;;  %v540_v23 = vmul.f32 %v2501_v20, %v2490_v9  ;;  %v2517_v35 = vpop.eup %2025  ;;  %vm609_vm6 = vmor %vm607_vm5, %vm608_vm4  ;;  %vm546_vm7 = vweird.f32 %v2501_v20 }
 0x216   :  { %v277_v58 = vmul.f32 0.5, %v276_v57  ;;  %v1322_v59 = vmul.f32 %v2016_v43, %v1321_v56  ;;  %v603_v22 = vmul.f32 %v2022_v18, %v602_v31  ;;  %v2526_v47 = vpop.eup %2027  ;;  %v2540_v57 = vmax.f32 %v596_v29, 1e-24  ;;  %vm547_vm9 = vmor %vm545_vm8, %vm546_vm7 }
 0x217   :  { %v614_v19 = vmul.f32 0.5, %v613_v14  ;;  %v541_v30 = vmul.f32 %v2501_v20, %v540_v23  ;;  %v1338_v52 = vmul.f32 %v2526_v47, %v2511_v32  ;;  %vm976_vm12 = vweird.f32 %v2517_v35 }
 0x218   :  { %v278_v61 = vsub.f32 1.5, %v277_v58  ;;  %v2485_v62 = vpop.xlane.xlu0 %172  ;;  %v1326_v0 = vsel %vm1325_vm11, %v2016_v43, %v1322_v59  ;;  %v604_v28 = vmul.f32 0.5, %v603_v22  ;;  %v970_v43 = vmul.f32 %v2517_v35, %v2504_v21  ;;  %v876_v49 = vpop.xlane.xlu1 %875 }
 0x219   :  { %v1357_v5 = vmul.f32 %v1326_v0, %v2355_v4  ;;  %v615_v24 = vsub.f32 1.5, %v614_v19  ;;  %v542_v38 = vmul.f32 0.5, %v541_v30  ;;  %v2532_v50 = vpop.eup %2029  ;;  %v2538_v56 = vmax.f32 %v876_v49, 1e-24 }
 0x21a   :  { %v279_v7 = vmul.f32 %v2018_v51, %v278_v61  ;;  %v605_v37 = vsub.f32 1.5, %v604_v28  ;;  %v971_v48 = vmul.f32 %v2517_v35, %v970_v43  ;;  %v1339_v0 = vmul.f32 %v2526_v47, %v1338_v52 }
 0x21b   :  { %1378 = vrot.lane.b32.xlu2 %v1357_v5, %s2285_s23  ;;  %v616_v34 = vmul.f32 %v2020_v2, %v615_v24  ;;  %v543_v45 = vsub.f32 1.5, %v542_v38  ;;  %vm1344_vm2 = vweird.f32 %v2526_v47  ;;  %vm628_vm5 = vweird.f32 %v2532_v50 }
 0x21c   :  { %v283_v11 = vsel %vm282_vm14, %v2018_v51, %v279_v7  ;;  %v606_v46 = vmul.f32 %v2022_v18, %v605_v37  ;;  %v972_v59 = vmul.f32 0.5, %v971_v48  ;;  %vm975_vm14 = vweird.f32 %v2504_v21 }
 0x21d   :  { %v296_v12 = vmul.f32 %v283_v11, %v2372_v8  ;;  %v620_v40 = vsel %vm619_vm3, %v2020_v2, %v616_v34  ;;  %v544_v51 = vmul.f32 %v2501_v20, %v543_v45  ;;  %v622_v2 = vmul.f32 %v2532_v50, %v2514_v25  ;;  %vm2577_vm15 = vmor %vm975_vm14, %vm976_vm12 }
 0x21e   :  { %v642_v44 = vmul.f32 %v620_v40, %v2362_v6  ;;  %v610_v53 = vsel %vm609_vm6, %v2022_v18, %v606_v46  ;;  %v2556_v11 = vmax.f32 %v2465_v3, 1e-24  ;;  %v2570_v34 = vmax.f32 %v2417_v33, 1e-24 }
 0x21f   :  { %351 = vrot.lane.b32.xlu1 %v296_v12, %s2284_s22  ;;  %v641_v60 = vmul.f32 %v610_v53, %v2355_v4  ;;  %v548_v7 = vsel %vm547_vm9, %v2501_v20, %v544_v51  ;;  %v973_v12 = vsub.f32 1.5, %v972_v59  ;;  %v623_v18 = vmul.f32 %v2532_v50, %v622_v2 }
 0x220   :  { %v2496_v16 = vpop.xlane.xlu0 %950  ;;  %v570_v14 = vmul.f32 %v548_v7, %v2362_v6  ;;  %v1306_v23 = vpop.xlane.xlu1 %1305  ;;  %v1238_v33 = vsel %vm161_vm1, %v2449_v13, 0.0  ;;  %vm1343_vm3 = vweird.f32 %v2511_v32  ;;  %v2619_v59 = vmax.f32 %v2440_v63, 1e-24 }
 0x221   :  { %1236 = vadd.xlane.f32.xlu0 %v1235_v17  ;;  %v1340_v17 = vmul.f32 0.5, %v1339_v0  ;;  %v624_v28 = vmul.f32 0.5, %v623_v18  ;;  %v974_v30 = vmul.f32 %v2517_v35, %v973_v12  ;;  %v2599_v49 = vmax.f32 %v1306_v23, 1e-24  ;;  %vm2602_vm4 = vmor %vm1343_vm3, %vm1344_vm2 }
 0x222   :  { %v648_v3 = vmul.f32 %v2461_v55, %v570_v14  ;;  %vm627_vm6 = vweird.f32 %v2514_v25  ;;  %vm555_vm9 = vweird.f32 %v2520_v42 }
 0x223   :  { %v1341_v26 = vsub.f32 1.5, %v1340_v17  ;;  %v978_v21 = vsel %vm2577_vm15, %v2517_v35, %v974_v30  ;;  %vm2628_vm8 = vmor %vm627_vm6, %vm628_vm5  ;;  %vm903_vm15 = vweird.f32 %v2538_v56 }
 0x224   :  { %v1000_v53 = vmul.f32 %v978_v21, %v2362_v6 }
 0x225   :  { %v1342_v45 = vmul.f32 %v2526_v47, %v1341_v26 }
 0x227   :  { %v1346_v32 = vsel %vm2602_vm4, %v2526_v47, %v1342_v45  ;;  %vm565_vm4 = vweird.f32 %v2556_v11 }
 0x228   :  { %v2508_v27 = vpop.xlane.xlu0 %1230  ;;  %v1359_v63 = vmul.f32 %v1346_v32, %v2372_v8 }
 0x229   :  { %v2608_v52 = vmax.f32 %v2508_v27, 1e-24  ;;  %v879_v27 = vpop.xlane.xlu1 %878 }
 0x230   :  { %v882_v39 = vpop.xlane.xlu0 %881 }
 0x231   :  { %v886_v41 = vmax.f32 %v882_v39, 1e-24 }
 0x233   :  { %2031 = vrsqrt.f32 %v886_v41  ;;  %vm923_vm11 = vweird.f32 %v886_v41 }
 0x234   :  { %2033 = vrsqrt.f32 %v2520_v42 }
 0x235   :  { %664 = vrot.lane.b32.xlu0 %v642_v44, %s2286_s24  ;;  %2035 = vrsqrt.f32 %v2538_v56  ;;  %v625_v44 = vsub.f32 1.5, %v624_v28 }
 0x236   :  { %2037 = vrsqrt.f32 %v2540_v57 }
 0x237   :  { %2039 = vrsqrt.f32 %v2556_v11 }
 0x238   :  { %2041 = vrsqrt.f32 %v2570_v34  ;;  %v1234_v48 = vpop.xlane.xlu0 %1233 }
 0x239   :  { %v2032_v54 = vpop.eup %2031 }
 0x23a   :  { %v918_v58 = vmul.f32 %v2032_v54, %v886_v41  ;;  %v2544_v61 = vpop.eup %2033  ;;  %vm924_vm10 = vweird.f32 %v2032_v54  ;;  %v2582_v41 = vmax.f32 %v2496_v16, 1e-24 }
 0x23b   :  { %v550_v15 = vmul.f32 %v2544_v61, %v2520_v42  ;;  %v2560_v20 = vpop.eup %2035  ;;  %vm925_vm13 = vmor %vm923_vm11, %vm924_vm10  ;;  %vm556_vm7 = vweird.f32 %v2544_v61  ;;  %vm637_vm11 = vweird.f32 %v2540_v57 }
 0x23c   :  { %v919_v5 = vmul.f32 %v2032_v54, %v918_v58  ;;  %v2566_v24 = vpop.eup %2037  ;;  %v898_v38 = vmul.f32 %v2560_v20, %v2538_v56  ;;  %2043 = vrsqrt.f32 %v2582_v41  ;;  %v626_v58 = vmul.f32 %v2532_v50, %v625_v44  ;;  %vm2650_vm10 = vmor %vm555_vm9, %vm556_vm7 }
 0x23d   :  { %662 = vrot.lane.b32.xlu0 %v641_v60, %s2286_s24  ;;  %v551_v22 = vmul.f32 %v2544_v61, %v550_v15  ;;  %v2592_v46 = vpop.eup %2039  ;;  %v632_v16 = vmul.f32 %v2566_v24, %v2540_v57  ;;  %2045 = vrsqrt.f32 %v2599_v49  ;;  %vm638_vm12 = vweird.f32 %v2566_v24 }
 0x23e   :  { %v920_v9 = vmul.f32 0.5, %v919_v5  ;;  %v899_v13 = vmul.f32 %v2560_v20, %v898_v38  ;;  %v2625_v0 = vpop.eup %2041  ;;  %2047 = vrsqrt.f32 %v2608_v52  ;;  %v630_v25 = vsel %vm2628_vm8, %v2532_v50, %v626_v58  ;;  %vm2681_vm14 = vmor %vm637_vm11, %vm638_vm12 }
 0x23f   :  { %v552_v39 = vmul.f32 0.5, %v551_v22  ;;  %v633_v60 = vmul.f32 %v2566_v24, %v632_v16  ;;  %2049 = vrsqrt.f32 %v2619_v59  ;;  %v179_v14 = vmul.f32 %v2625_v0, %v2570_v34 }
 0x240   :  { %v921_v31 = vsub.f32 1.5, %v920_v9  ;;  %v900_v2 = vmul.f32 0.5, %v899_v13  ;;  %v2636_v9 = vmax.f32 %v879_v27, 1e-24  ;;  %v643_v50 = vmul.f32 %v630_v25, %v2372_v8  ;;  %v1312_v23 = vpop.xlane.xlu0 %1311 }
 0x241   :  { %v553_v35 = vsub.f32 1.5, %v552_v39  ;;  %v634_v12 = vmul.f32 0.5, %v633_v60  ;;  %v180_v28 = vmul.f32 %v2625_v0, %v179_v14  ;;  %vm566_vm3 = vweird.f32 %v2592_v46 }
 0x242   :  { %v922_v19 = vmul.f32 %v2032_v54, %v921_v31  ;;  %v2641_v15 = vpop.eup %2043  ;;  %v901_v17 = vsub.f32 1.5, %v900_v2  ;;  %2051 = vrsqrt.f32 %v2636_v9  ;;  %vm2717_vm5 = vmor %vm565_vm4, %vm566_vm3  ;;  %vm185_vm6 = vweird.f32 %v2625_v0 }
 0x243   :  { %v554_v5 = vmul.f32 %v2544_v61, %v553_v35  ;;  %v2655_v31 = vpop.eup %2045  ;;  %v980_v22 = vmul.f32 %v2641_v15, %v2582_v41  ;;  %v635_v26 = vsub.f32 1.5, %v634_v12  ;;  %v181_v45 = vmul.f32 0.5, %v180_v28 }
 0x244   :  { %v926_v29 = vsel %vm925_vm13, %v2032_v54, %v922_v19  ;;  %v560_v54 = vmul.f32 %v2592_v46, %v2556_v11  ;;  %v902_v30 = vmul.f32 %v2560_v20, %v901_v17  ;;  %vm904_vm13 = vweird.f32 %v2560_v20 }
 0x245   :  { %658 = vrot.lane.b32.xlu0 %v648_v3, %s2283_s4  ;;  %v930_v37 = vmul.f32 %v926_v29, %v2384_v10  ;;  %v558_v42 = vsel %vm2650_vm10, %v2544_v61, %v554_v5  ;;  %v2663_v3 = vpop.eup %2047  ;;  %v981_v39 = vmul.f32 %v2641_v15, %v980_v22  ;;  %v636_v44 = vmul.f32 %v2566_v24, %v635_v26  ;;  %vm2693_vm2 = vmor %vm903_vm15, %vm904_vm13 }
 0x246   :  { %v561_v7 = vmul.f32 %v2592_v46, %v560_v54  ;;  %v2669_v29 = vpop.eup %2049  ;;  %v571_v61 = vmul.f32 %v558_v42, %v2372_v8  ;;  %v1246_v40 = vmul.f32 %v2663_v3, %v2608_v52  ;;  %vm986_vm7 = vweird.f32 %v2641_v15 }
 0x247   :  { %v1008_v43 = vmul.f32 %v2476_v36, %v930_v37  ;;  %v2673_v37 = vmax.f32 %v1312_v23, 1e-24  ;;  %v189_v16 = vmul.f32 %v2669_v29, %v2619_v59  ;;  %v982_v51 = vmul.f32 0.5, %v981_v39 }
 0x248   :  { %v562_v19 = vmul.f32 0.5, %v561_v7  ;;  %v2689_v21 = vpop.eup %2051  ;;  %v649_v56 = vmul.f32 %v2461_v55, %v571_v61  ;;  %v640_v58 = vsel %vm2681_vm14, %v2566_v24, %v636_v44  ;;  %vm184_vm8 = vweird.f32 %v2570_v34 }
 0x249   :  { %1239 = vadd.xlane.f32.xlu1 %v1238_v33  ;;  %1059 = vrot.lane.b32.xlu2 %v1008_v43, %s2282_s3  ;;  %v2679_v33 = vmax.f32 %v1234_v48, 1e-24  ;;  %v1328_v43 = vmul.f32 %v2655_v31, %v2599_v49  ;;  %2053 = vrsqrt.f32 %v2673_v37  ;;  %v906_v48 = vsel %vm2693_vm2, %v2560_v20, %v902_v30  ;;  %vm2748_vm9 = vmor %vm184_vm8, %vm185_vm6 }
 0x24a   :  { %v563_v38 = vsub.f32 1.5, %v562_v19  ;;  %v908_v32 = vmul.f32 %v2689_v21, %v2636_v9  ;;  %v182_v20 = vsub.f32 1.5, %v181_v45  ;;  %v190_v60 = vmul.f32 %v2669_v29, %v189_v16 }
 0x24b   :  { %2055 = vrsqrt.f32 %v2679_v33  ;;  %v1329_v54 = vmul.f32 %v2655_v31, %v1328_v43  ;;  %v928_v2 = vmul.f32 %v906_v48, %v2362_v6  ;;  %v983_v47 = vsub.f32 1.5, %v982_v51 }
 0x24c   :  { %v564_v35 = vmul.f32 %v2592_v46, %v563_v38  ;;  %v644_v5 = vmul.f32 %v640_v58, %v2384_v10  ;;  %v909_v25 = vmul.f32 %v2689_v21, %v908_v32  ;;  %v183_v14 = vmul.f32 %v2625_v0, %v182_v20 }
 0x24d   :  { %1022 = vrot.lane.b32.xlu0 %v1000_v53, %s2288_s26  ;;  %v1247_v53 = vmul.f32 %v2663_v3, %v1246_v40  ;;  %v1330_v7 = vmul.f32 0.5, %v1329_v54  ;;  %v191_v17 = vmul.f32 0.5, %v190_v60  ;;  %v1006_v18 = vmul.f32 %v2476_v36, %v928_v2 }
 0x24e   :  { %v568_v24 = vsel %vm2717_vm5, %v2592_v46, %v564_v35  ;;  %v984_v22 = vmul.f32 %v2641_v15, %v983_v47  ;;  %v910_v42 = vmul.f32 0.5, %v909_v25  ;;  %vm985_vm10 = vweird.f32 %v2582_v41 }
 0x24f   :  { %v2726_v11 = vpop.eup %2053  ;;  %v572_v46 = vmul.f32 %v568_v24, %v2384_v10  ;;  %v1331_v23 = vsub.f32 1.5, %v1330_v7  ;;  %v192_v30 = vsub.f32 1.5, %v191_v17  ;;  %vm2753_vm11 = vmor %vm985_vm10, %vm986_vm7  ;;  %v187_v38 = vsel %vm2748_vm9, %v2625_v0, %v183_v14 }
 0x250   :  { %v1348_v19 = vmul.f32 %v2726_v11, %v2673_v37  ;;  %vm1252_vm12 = vweird.f32 %v2663_v3  ;;  %v988_v41 = vsel %vm2753_vm11, %v2641_v15, %v984_v22  ;;  %vm1334_vm13 = vweird.f32 %v2655_v31 }
 0x251   :  { %1421 = vrot.lane.b32.xlu2 %v1359_v63, %s2285_s23  ;;  %v1248_v63 = vmul.f32 0.5, %v1247_v53  ;;  %v2729_v12 = vpop.eup %2055  ;;  %v650_v34 = vmul.f32 %v2461_v55, %v572_v46  ;;  %v911_v55 = vsub.f32 1.5, %v910_v42  ;;  %v1332_v0 = vmul.f32 %v2655_v31, %v1331_v23  ;;  %v354_v53 = vpop.permute.xlu2 %353 }
 0x252   :  { %v1256_v26 = vmul.f32 %v2729_v12, %v2679_v33  ;;  %v1349_v40 = vmul.f32 %v2726_v11, %v1348_v19  ;;  %v2774_v44 = vmax.f32 %v2443_v1, 1e-24  ;;  %vm1251_vm14 = vweird.f32 %v2608_v52 }
 0x253   :  { %v218_v15 = vmul.f32 %v187_v38, %v2355_v4  ;;  %v2780_v16 = vstv %s2733_s30  ;;  %v193_v13 = vmul.f32 %v2669_v29, %v192_v30  ;;  %vm195_vm15 = vweird.f32 %v2669_v29  ;;  %vm2787_vm3 = vmor %vm1251_vm14, %vm1252_vm12 }
 0x254   :  { %v1257_v43 = vmul.f32 %v2729_v12, %v1256_v26  ;;  %vm1333_vm2 = vweird.f32 %v2599_v49  ;;  %v1001_v52 = vmul.f32 %v988_v41, %v2372_v8  ;;  %vm194_vm4 = vweird.f32 %v2619_v59 }
 0x255   :  { %705 = vrot.lane.b32.xlu0 %v643_v50, %s2286_s24  ;;  %v1249_v50 = vsub.f32 1.5, %v1248_v63  ;;  %vm2795_vm5 = vmor %vm1333_vm2, %vm1334_vm13  ;;  %v1350_v48 = vmul.f32 0.5, %v1349_v40  ;;  %v912_v35 = vmul.f32 %v2689_v21, %v911_v55  ;;  %vm914_vm6 = vweird.f32 %v2689_v21 }
 0x256   :  { %v1258_v51 = vmul.f32 0.5, %v1257_v43  ;;  %v1336_v59 = vsel %vm2795_vm5, %v2655_v31, %v1332_v0  ;;  %vm196_vm7 = vmor %vm194_vm4, %vm195_vm15  ;;  %2057 = vrsqrt.f32 %v2774_v44  ;;  %vm913_vm8 = vweird.f32 %v2636_v9 }
 0x257   :  { %v1250_v39 = vmul.f32 %v2663_v3, %v1249_v50  ;;  %v197_v32 = vsel %vm196_vm7, %v2669_v29, %v193_v13  ;;  %vm915_vm9 = vmor %vm913_vm8, %vm914_vm6  ;;  %v1351_v58 = vsub.f32 1.5, %v1350_v48  ;;  %v1358_v31 = vmul.f32 %v1336_v59, %v2362_v6 }
 0x258   :  { %v2820_v20 = vstv %s2767_s7  ;;  %v1259_v60 = vsub.f32 1.5, %v1258_v51  ;;  %v916_v27 = vsel %vm915_vm9, %v2689_v21, %v912_v35  ;;  %v219_v2 = vmul.f32 %v197_v32, %v2362_v6 }
 0x259   :  { %v1254_v49 = vsel %vm2787_vm3, %v2663_v3, %v1250_v39  ;;  %v300_v3 = vmul.f32 %v2780_v16, %v218_v15  ;;  %v177_v9 = vmax.f32 %v2485_v62, 1e-24  ;;  %vm1354_vm10 = vweird.f32 %v2726_v11 }
 0x25a   :  { %v1285_v54 = vmul.f32 %v1254_v49, %v2355_v4  ;;  %v929_v29 = vmul.f32 %v916_v27, %v2372_v8  ;;  %v1352_v63 = vmul.f32 %v2726_v11, %v1351_v58  ;;  %v1260_v24 = vmul.f32 %v2729_v12, %v1259_v60 }
 0x25b   :  { %vm1262_vm11 = vweird.f32 %v2729_v12  ;;  %vm1353_vm12 = vweird.f32 %v2673_v37  ;;  %v301_v21 = vmul.f32 %v2780_v16, %v219_v2  ;;  %2059 = vrsqrt.f32 %v177_v9 }
 0x25c   :  { %v1363_v47 = vmul.f32 %v2820_v20, %v1285_v54  ;;  %vm1261_vm13 = vweird.f32 %v2679_v33  ;;  %vm1355_vm14 = vmor %vm1353_vm12, %vm1354_vm10  ;;  %v1007_v7 = vmul.f32 %v2476_v36, %v929_v29  ;;  %vm204_vm3 = vweird.f32 %v2774_v44 }
 0x25d   :  { %699 = vrot.lane.b32.xlu0 %v649_v56, %s2283_s4  ;;  %vm1263_vm15 = vmor %vm1261_vm13, %vm1262_vm11  ;;  %v1356_v25 = vsel %vm1355_vm14, %v2726_v11, %v1352_v63  ;;  %vm214_vm6 = vweird.f32 %v177_v9  ;;  %v657_v56 = vpop.permute.xlu2 %656  ;;  %v305_v63 = vpack.c.bf16 %v2362_v6, %v2362_v6  ;;  %vm388_vm14 = vcmask 130048  }
 0x25e   :  { %v1264_v14 = vsel %vm1263_vm15, %v2729_v12, %v1260_v24  ;;  %v1360_v37 = vmul.f32 %v1356_v25, %v2384_v10  ;;  %v304_v24 = vpack.c.bf16 %v2355_v4, %v2355_v4  ;;  %vm1212_vm15 = vcmask 195712  }
 0x260   :  { %v444_v25 = vunpack.c.l.b16 %v304_v24  ;;  %v1368_v24 = vld [vmem:[#allocation10 + $0x30] sm:$0xff] }
 0x262   :  { %707 = vrot.lane.b32.xlu1 %v644_v5, %s2286_s24  ;;  %v2058_v5 = vpop.eup %2057 }
 0x263   :  { %v199_v62 = vmul.f32 %v2058_v5, %v2774_v44  ;;  %v2060_v33 = vpop.eup %2059  ;;  %vm205_vm2 = vweird.f32 %v2058_v5 }
 0x264   :  { %v209_v50 = vmul.f32 %v2060_v33, %v177_v9  ;;  %vm206_vm4 = vmor %vm204_vm3, %vm205_vm2  ;;  %vm215_vm5 = vweird.f32 %v2060_v33  ;;  %vm1570_vm2 = vcmask 261312   ;;  %vm1633_vm3 = vcmask 1041409  }
 0x265   :  { %1016 = vrot.lane.b32.xlu0 %v1006_v18, %s2282_s3  ;;  %v315_v57 = vpop.permute.xlu1 %314  ;;  %v200_v17 = vmul.f32 %v2058_v5, %v199_v62  ;;  %v1286_v18 = vmul.f32 %v1264_v14, %v2362_v6  ;;  %vm216_vm7 = vmor %vm214_vm6, %vm215_vm5  ;;  %v1021_v51 = vpop.permute.xlu2 %1020  ;;  %vm1639_vm5 = vcmask 1047559   ;;  %vm1642_vm6 = vcmask 254976  }
 0x266   :  { %1918 = vmatpush.xpose.msk.msra.mxu2 %vm161_vm1, %v315_v57  ;;  %v210_v11 = vmul.f32 %v2060_v33, %v209_v50  ;;  %v308_v50 = vld [vmem:[#allocation10] sm:$0xff] }
 0x267   :  { %v201_v46 = vmul.f32 0.5, %v200_v17  ;;  %v1364_v19 = vmul.f32 %v2820_v20, %v1286_v18 }
 0x268   :  { %v211_v12 = vmul.f32 0.5, %v210_v11 }
 0x269   :  { %v313_v45 = vpop.permute.xlu0 %312  ;;  %v202_v36 = vsub.f32 1.5, %v201_v46 }
 0x26a   :  { %701 = vrot.lane.b32.xlu1 %v650_v34, %s2283_s4  ;;  %1919 = vmatpush.xpose.msk.msra.mxu2 %vm161_vm1, %v313_v45  ;;  %v212_v42 = vsub.f32 1.5, %v211_v12 }
 0x26b   :  { %v203_v22 = vmul.f32 %v2058_v5, %v202_v36 }
 0x26c   :  { %v213_v28 = vmul.f32 %v2060_v33, %v212_v42  ;;  %v652_v42 = vld [vmem:[#allocation10 + $0x10] sm:$0xff] }
 0x26d   :  { %1063 = vrot.lane.b32.xlu0 %v1001_v52, %s2288_s26  ;;  %1920 = vmatmul.msk.f32.vlgmr.msra.gmra.mxu2 %vm161_vm1, %v300_v3  ;;  %v207_v23 = vsel %vm206_vm4, %v2058_v5, %v203_v22  ;;  %v1015_v3 = vpop.permute.xlu2 %1014  ;;  %vm1635_vm4 = vcmask 1043459  }
 0x26e   :  { %1922 = vmatpush.xpose.msk.msrb.mxu2 %vm161_vm1, %v354_v53  ;;  %v220_v26 = vmul.f32 %v207_v23, %v2372_v8  ;;  %v217_v38 = vsel %vm216_vm7, %v2060_v33, %v213_v28  ;;  %vm1654_vm7 = vcmask 517376  }
 0x26f   :  { %v221_v40 = vmul.f32 %v217_v38, %v2384_v10  ;;  %v653_v38 = vld [vmem:[#allocation10 + $0x18] sm:$0xff] }
 0x270   :  { %v302_v61 = vmul.f32 %v2780_v16, %v220_v26 }
 0x271   :  { %v303_v57 = vmul.f32 %v2780_v16, %v221_v40 }
 0x272   :  { %1380 = vrot.lane.b32.xlu1 %v1358_v31, %s2285_s23 }
 0x275   :  { %1372 = vrot.lane.b32.xlu0 %v1363_v47, %s2287_s25  ;;  %1921 = vmatmul.msk.f32.gmra.mxu2 %vm161_vm1, %v301_v21  ;;  %v1066_v21 = vpop.permute.xlu2 %1065 }
 0x27a   :  { %1057 = vrot.lane.b32.xlu1 %v1007_v7, %s2282_s3  ;;  %v445_v7 = vunpack.c.l.b16 %v305_v63 }
 0x27d   :  { %1423 = vrot.lane.b32.xlu0 %v1360_v37, %s2285_s23  ;;  %v1379_v4 = vpop.permute.xlu2 %1378 }
 0x282   :  { %1374 = vrot.lane.b32.xlu1 %v1364_v19, %s2287_s25 }
 0x291   :  { %v352_v30 = vpop.permute.xlu1 %351 }
 0x292   :  { %1923 = vmatpush.xpose.msk.msrb.mxu2 %vm161_vm1, %v352_v30 }
 0x294   :  { %v1237_v34 = vpop.xlane.xlu0 %1236 }
 0x295   :  { %v1243_v39 = vmax.f32 %v1237_v34, 1e-24  ;;  %1924 = vmatmul.msk.f32.vlgmr.msrb.gmra.mxu2 %vm161_vm1, %v302_v61  ;;  %v309_v61 = vld [vmem:[#allocation10 + $0x8] sm:$0xff] }
 0x297   :  { %2061 = vrsqrt.f32 %v1243_v39  ;;  %vm1271_vm9 = vweird.f32 %v1243_v39 }
 0x29d   :  { %v2062_v41 = vpop.eup %2061  ;;  %1925 = vmatmul.msk.f32.gmra.mxu2 %vm161_vm1, %v303_v57 }
 0x29e   :  { %v1266_v55 = vmul.f32 %v2062_v41, %v1243_v39  ;;  %vm1272_vm8 = vweird.f32 %v2062_v41 }
 0x29f   :  { %vm1273_vm10 = vmor %vm1271_vm9, %vm1272_vm8  ;;  %vm1672_vm8 = vcmask 779776   ;;  %vm1690_vm9 = vcmask 1042176  }
 0x2a0   :  { %v1267_v43 = vmul.f32 %v2062_v41, %v1266_v55 }
 0x2a2   :  { %v1268_v0 = vmul.f32 0.5, %v1267_v43 }
 0x2a3   :  { %v1060_v18 = vpop.permute.xlu2 %1059 }
 0x2a4   :  { %v1269_v44 = vsub.f32 1.5, %v1268_v0 }
 0x2a6   :  { %v1270_v45 = vmul.f32 %v2062_v41, %v1269_v44  ;;  %v1010_v44 = vld [vmem:[#allocation10 + $0x20] sm:$0xff] }
 0x2a7   :  { %v665_v15 = vpop.permute.xlu0 %664 }
 0x2a8   :  { %1929 = vmatpush.xpose.msk.msra.mxu1 %vm161_vm1, %v665_v15  ;;  %v1274_v13 = vsel %vm1273_vm10, %v2062_v41, %v1270_v45 }
 0x2a9   :  { %v1287_v1 = vmul.f32 %v1274_v13, %v2372_v8 }
 0x2ab   :  { %v1365_v52 = vmul.f32 %v2820_v20, %v1287_v1  ;;  %v1422_v19 = vpop.permute.xlu2 %1421 }
 0x2ad   :  { %1415 = vrot.lane.b32.xlu1 %v1365_v52, %s2287_s25 }
 0x2af   :  { %v663_v16 = vpop.permute.xlu0 %662 }
 0x2b0   :  { %1930 = vmatpush.xpose.msk.msra.mxu1 %vm161_vm1, %v663_v16  ;;  %v306_v16 = vpack.c.bf16 %v2372_v8, %v2372_v8 }
 0x2b3   :  { %1931 = vmatmul.msk.f32.vlgmr.msra.gmra.mxu1 %vm161_vm1, %v657_v56  ;;  %v307_v56 = vpack.c.bf16 %v2384_v10, %v2384_v10 }
 0x2b7   :  { %v659_v48 = vpop.permute.xlu0 %658 }
 0x2bb   :  { %1932 = vmatmul.msk.f32.gmra.mxu1 %vm161_vm1, %v659_v48 }
 0x2bc   :  { %v1240_v49 = vpop.xlane.xlu1 %1239 }
 0x2bd   :  { %v1244_v35 = vmax.f32 %v1240_v49, 1e-24  ;;  %v474_v49 = vunpack.c.l.b16 %v306_v16 }
 0x2bf   :  { %2063 = vrsqrt.f32 %v1244_v35  ;;  %v1023_v53 = vpop.permute.xlu0 %1022  ;;  %vm1281_vm12 = vweird.f32 %v1244_v35 }
 0x2c0   :  { %1940 = vmatpush.xpose.msk.msrb.mxu1 %vm161_vm1, %v1023_v53 }
 0x2c4   :  { %1941 = vmatpush.xpose.msk.msrb.mxu1 %vm161_vm1, %v1021_v51 }
 0x2c5   :  { %v2064_v59 = vpop.eup %2063 }
 0x2c6   :  { %v1276_v54 = vmul.f32 %v2064_v59, %v1244_v35  ;;  %vm1282_vm11 = vweird.f32 %v2064_v59  ;;  %v475_v35 = vunpack.c.l.b16 %v307_v56 }
 0x2c7   :  { %1942 = vmatmul.msk.f32.vlgmr.msrb.gmra.mxu1 %vm161_vm1, %v1015_v3  ;;  %v706_v32 = vpop.permute.xlu0 %705  ;;  %vm1283_vm13 = vmor %vm1281_vm12, %vm1282_vm11 }
 0x2c8   :  { %v1277_v58 = vmul.f32 %v2064_v59, %v1276_v54  ;;  %v2923_v51 = vpack.c.b16 %v475_v35, %v474_v49 }
 0x2ca   :  { %v1278_v31 = vmul.f32 0.5, %v1277_v58 }
 0x2cc   :  { %v1279_v60 = vsub.f32 1.5, %v1278_v31 }
 0x2ce   :  { %v1280_v27 = vmul.f32 %v2064_v59, %v1279_v60 }
 0x2cf   :  { %v700_v2 = vpop.permute.xlu0 %699 }
 0x2d0   :  { %v1284_v9 = vsel %vm1283_vm13, %v2064_v59, %v1280_v27  ;;  %v1011_v59 = vld [vmem:[#allocation10 + $0x28] sm:$0xff] }
 0x2d1   :  { %v1288_v47 = vmul.f32 %v1284_v9, %v2384_v10 }
 0x2d3   :  { %v1366_v29 = vmul.f32 %v2820_v20, %v1288_v47  ;;  %v2876_v20 = vpack.c.b16 %v445_v7, %v444_v25 }
 0x2d4   :  { %v708_v5 = vpop.permute.xlu1 %707 }
 0x2d5   :  { %1417 = vrot.lane.b32.xlu0 %v1366_v29, %s2287_s25  ;;  %1933 = vmatpush.xpose.msk.msra.mxu2 %vm161_vm1, %v708_v5  ;;  %v1369_v29 = vld [vmem:[#allocation10 + $0x38] sm:$0xff] }
 0x2d7   :  { %v1017_v62 = vpop.permute.xlu0 %1016 }
 0x2d8   :  { %1943 = vmatmul.msk.f32.gmra.mxu1 %vm161_vm1, %v1017_v62 }
 0x2d9   :  { %1934 = vmatpush.xpose.msk.msra.mxu2 %vm161_vm1, %v706_v32 }
 0x2dc   :  { %v702_v6 = vpop.permute.xlu1 %701  ;;  %1935 = vmatmul.msk.f32.vlgmr.msra.gmra.mxu2 %vm161_vm1, %v700_v2 }
 0x2dd   :  { %1944 = vmatpush.xpose.msk.msrb.mxu2 %vm161_vm1, %v1066_v21  ;;  %447 = vrot.lane.b32.xlu0 %v2876_v20, %s2274_s29 }
 0x2df   :  { %v1064_v14 = vpop.permute.xlu0 %1063 }
 0x2e1   :  { %1945 = vmatpush.xpose.msk.msrb.mxu2 %vm161_vm1, %v1064_v14 }
 0x2e4   :  { %v1381_v37 = vpop.permute.xlu1 %1380  ;;  %1936 = vmatmul.msk.f32.gmra.mxu2 %vm161_vm1, %v702_v6 }
 0x2e5   :  { %1951 = vmatpush.xpose.msk.msra.mxu1 %vm161_vm1, %v1381_v37 }
 0x2e7   :  { %v1373_v17 = vpop.permute.xlu0 %1372 }
 0x2e9   :  { %1952 = vmatpush.xpose.msk.msra.mxu1 %vm161_vm1, %v1379_v4 }
 0x2ec   :  { %v1058_v33 = vpop.permute.xlu1 %1057  ;;  %1953 = vmatmul.msk.f32.vlgmr.msra.gmra.mxu1 %vm161_vm1, %v1373_v17 }
 0x2ed   :  { %1946 = vmatmul.msk.f32.vlgmr.msrb.gmra.mxu2 %vm161_vm1, %v1058_v33 }
 0x2ef   :  { %v1424_v46 = vpop.permute.xlu0 %1423 }
 0x2f0   :  { %1955 = vmatpush.xpose.msk.msra.mxu2 %vm161_vm1, %v1424_v46  ;;  %v343_v36 = vpop.f32.mrf.mxu2 }
 0x2f1   :  { %v2888_v11 = vadd.f32 %v343_v36, %v308_v50 }
 0x2f3   :  { %v389_v12 = vsel %vm388_vm14, %v2888_v11, -inf }
 0x2f4   :  { %v1375_v22 = vpop.permute.xlu1 %1374  ;;  %1956 = vmatpush.xpose.msk.msra.mxu2 %vm161_vm1, %v1422_v19  ;;  %390 = vmax.xlane.f32.xlu2 %v389_v12 }
 0x2f5   :  { %1947 = vmatmul.msk.f32.gmra.mxu2 %vm161_vm1, %v1060_v18  ;;  %1954 = vmatmul.msk.f32.gmra.mxu1 %vm161_vm1, %v1375_v22 }
 0x2f8   :  { %v346_v34 = vpop.f32.mrf.mxu2 }
 0x2f9   :  { %v2900_v39 = vadd.f32 %v346_v34, %v309_v61 }
 0x2fb   :  { %v392_v41 = vsel %vm388_vm14, %v2900_v39, -inf }
 0x318   :  { %v382_v43 = vpop.f32.mrf.mxu2 }
 0x319   :  { %v2908_v0 = vadd.f32 %v382_v43, %v308_v50 }
 0x31b   :  { %v395_v45 = vsel %vm388_vm14, %v2908_v0, -inf }
 0x31f   :  { %v1416_v23 = vpop.permute.xlu1 %1415 }
 0x320   :  { %1957 = vmatmul.msk.f32.vlgmr.msra.gmra.mxu2 %vm161_vm1, %v1416_v23  ;;  %v385_v8 = vpop.f32.mrf.mxu2 }
 0x321   :  { %v2939_v2 = vadd.f32 %v385_v8, %v309_v61 }
 0x323   :  { %v398_v5 = vsel %vm388_vm14, %v2939_v2, -inf }
 0x330   :  { %v691_v26 = vpop.f32.mrf.mxu1 }
 0x331   :  { %v2896_v28 = vadd.f32 %v691_v26, %v652_v42 }
 0x333   :  { %v740_v30 = vsel %vm388_vm14, %v2896_v28, -inf }
 0x334   :  { %741 = vmax.xlane.f32.xlu1 %v740_v30 }
 0x338   :  { %v694_v40 = vpop.f32.mrf.mxu1 }
 0x339   :  { %v2902_v57 = vadd.f32 %v694_v40, %v653_v38 }
 0x33b   :  { %v743_v55 = vsel %vm388_vm14, %v2902_v57, -inf }
 0x33c   :  { %393 = vmax.xlane.f32.xlu1 %v392_v41  ;;  %744 = vmax.xlane.f32.xlu0 %v743_v55 }
 0x344   :  { %396 = vmax.xlane.f32.xlu0 %v395_v45  ;;  %v1049_v15 = vpop.f32.mrf.mxu1 }
 0x345   :  { %v2912_v13 = vadd.f32 %v1049_v15, %v1010_v44 }
 0x347   :  { %v1418_v1 = vpop.permute.xlu0 %1417  ;;  %v1098_v52 = vsel %vm388_vm14, %v2912_v13, -inf }
 0x348   :  { %1099 = vmax.xlane.f32.xlu2 %v1098_v52  ;;  %1958 = vmatmul.msk.f32.gmra.mxu2 %vm161_vm1, %v1418_v1 }
 0x34f   :  { %v448_v48 = vpop.permute.xlu0 %447 }
 0x350   :  { %460 = vmatpush.bf16.msra.mxu3 %v448_v48 }
 0x355   :  { %793 = vrot.lane.b32.xlu1 %v2876_v20, %s2289_s8  ;;  %v1052_v10 = vpop.f32.mrf.mxu1 }
 0x356   :  { %v2929_v3 = vadd.f32 %v1052_v10, %v1011_v59 }
 0x358   :  { %477 = vrot.lane.b32.xlu0 %v2923_v51, %s2274_s29  ;;  %v1101_v31 = vsel %vm388_vm14, %v2929_v3, -inf }
 0x35f   :  { %v734_v53 = vpop.f32.mrf.mxu2 }
 0x360   :  { %1151 = vrot.lane.b32.xlu2 %v2876_v20, %s2290_s9  ;;  %v2937_v27 = vadd.f32 %v734_v53, %v652_v42 }
 0x362   :  { %v746_v47 = vsel %vm388_vm14, %v2937_v27, -inf }
 0x367   :  { %v737_v54 = vpop.f32.mrf.mxu2  ;;  %v391_v18 = vpop.xlane.xlu2 %390 }
 0x368   :  { %v2931_v32 = vadd.f32 %v737_v54, %v653_v38  ;;  %v401_v33 = vsub.f32 %v2888_v11, %v391_v18 }
 0x369   :  { %v1407_v58 = vpop.f32.mrf.mxu1 }
 0x36a   :  { %v749_v60 = vsel %vm388_vm14, %v2931_v32, -inf  ;;  %v2947_v62 = vadd.f32 %v1407_v58, %v1368_v24  ;;  %v405_v46 = vmul.f32 1.442695, %v401_v33 }
 0x36c   :  { %v1456_v6 = vsel %vm388_vm14, %v2947_v62, -inf  ;;  %2065 = vpow2.f32 %v405_v46 }
 0x370   :  { %v1092_v9 = vpop.f32.mrf.mxu2 }
 0x371   :  { %v2955_v4 = vadd.f32 %v1092_v9, %v1010_v44 }
 0x372   :  { %v1410_v63 = vpop.f32.mrf.mxu1  ;;  %v2966_v22 = vpop.eup %2065 }
 0x373   :  { %v2945_v21 = vadd.f32 %v1410_v63, %v1369_v29  ;;  %v1104_v17 = vsel %vm388_vm14, %v2955_v4, -inf  ;;  %v413_v12 = vsel %vm388_vm14, %v2966_v22, 0.0 }
 0x375   :  { %v1459_v7 = vsel %vm388_vm14, %v2945_v21, -inf }
 0x378   :  { %v1095_v25 = vpop.f32.mrf.mxu2 }
 0x379   :  { %v2953_v14 = vadd.f32 %v1095_v25, %v1011_v59 }
 0x37b   :  { %v1107_v37 = vsel %vm388_vm14, %v2953_v14, -inf }
 0x37f   :  { %1102 = vmax.xlane.f32.xlu1 %v1101_v31 }
 0x382   :  { %750 = vmax.xlane.f32.xlu0 %v749_v60 }
 0x387   :  { %747 = vmax.xlane.f32.xlu1 %v746_v47 }
 0x389   :  { %399 = vmax.xlane.f32.xlu2 %v398_v5 }
 0x38f   :  { %1460 = vmax.xlane.f32.xlu1 %v1459_v7 }
 0x391   :  { %1457 = vmax.xlane.f32.xlu2 %v1456_v6 }
 0x397   :  { %1108 = vmax.xlane.f32.xlu1 %v1107_v37 }
 0x399   :  { %1105 = vmax.xlane.f32.xlu2 %v1104_v17 }
 0x3a3   :  { %v1450_v50 = vpop.f32.mrf.mxu2 }
 0x3a4   :  { %v2962_v19 = vadd.f32 %v1450_v50, %v1368_v24 }
 0x3a6   :  { %v1462_v36 = vsel %vm388_vm14, %v2962_v19, -inf }
 0x3a7   :  { %1463 = vmax.xlane.f32.xlu0 %v1462_v36  ;;  %v742_v61 = vpop.xlane.xlu1 %741 }
 0x3a8   :  { %v752_v38 = vsub.f32 %v2896_v28, %v742_v61 }
 0x3aa   :  { %v756_v40 = vmul.f32 1.442695, %v752_v38 }
 0x3af   :  { %414 = vadd.xlane.f32.xlu0 %v413_v12  ;;  %v745_v23 = vpop.xlane.xlu0 %744  ;;  %v394_v41 = vpop.xlane.xlu1 %393 }
 0x3b0   :  { %v753_v42 = vsub.f32 %v2902_v57, %v745_v23  ;;  %v402_v57 = vsub.f32 %v2900_v39, %v394_v41 }
 0x3b2   :  { %v758_v26 = vmul.f32 1.442695, %v753_v42  ;;  %v407_v15 = vmul.f32 1.442695, %v402_v57 }
 0x3b4   :  { %2067 = vpow2.f32 %v758_v26 }
 0x3b5   :  { %2069 = vpow2.f32 %v756_v40 }
 0x3b6   :  { %2071 = vpow2.f32 %v407_v15 }
 0x3b7   :  { %v397_v34 = vpop.xlane.xlu0 %396 }
 0x3b8   :  { %v403_v39 = vsub.f32 %v2908_v0, %v397_v34 }
 0x3ba   :  { %v2971_v11 = vpop.eup %2067  ;;  %v409_v35 = vmul.f32 1.442695, %v403_v39 }
 0x3bb   :  { %v767_v30 = vsel %vm388_vm14, %v2971_v11, 0.0  ;;  %v1100_v1 = vpop.xlane.xlu2 %1099  ;;  %v2981_v52 = vpop.eup %2069 }
 0x3bc   :  { %768 = vadd.xlane.f32.xlu1 %v767_v30  ;;  %v1110_v28 = vsub.f32 %v2912_v13, %v1100_v1  ;;  %v764_v16 = vsel %vm388_vm14, %v2981_v52, 0.0  ;;  %v2986_v48 = vpop.eup %2071 }
 0x3bd   :  { %v416_v49 = vsel %vm388_vm14, %v2986_v48, 0.0 }
 0x3be   :  { %v1114_v56 = vmul.f32 1.442695, %v1110_v28 }
 0x3c0   :  { %2073 = vpow2.f32 %v1114_v56 }
 0x3c1   :  { %2075 = vpow2.f32 %v409_v35 }
 0x3c3   :  { %v3001_v54 = vpop.permute.xlu2 %1151 }
 0x3c6   :  { %v2991_v8 = vpop.eup %2073 }
 0x3c7   :  { %v1122_v13 = vsel %vm388_vm14, %v2991_v8, 0.0  ;;  %v2995_v53 = vpop.permute.xlu1 %793  ;;  %v2997_v10 = vpop.eup %2075 }
 0x3c8   :  { %v419_v0 = vsel %vm388_vm14, %v2997_v10, 0.0 }
 0x3ca   :  { %v478_v55 = vpop.permute.xlu0 %477 }
 0x3cb   :  { %490 = vmatpush.bf16.msrb.mxu3 %v478_v55  ;;  %v1453_v43 = vpop.f32.mrf.mxu2 }
 0x3cc   :  { %v2976_v44 = vadd.f32 %v1453_v43, %v1369_v29 }
 0x3ce   :  { %v1465_v45 = vsel %vm388_vm14, %v2976_v44, -inf }
 0x3cf   :  { %1466 = vmax.xlane.f32.xlu2 %v1465_v45 }
 0x3d7   :  { %765 = vadd.xlane.f32.xlu2 %v764_v16 }
 0x3df   :  { %417 = vadd.xlane.f32.xlu2 %v416_v49 }
 0x3e7   :  { %1123 = vadd.xlane.f32.xlu2 %v1122_v13 }
 0x3ef   :  { %420 = vadd.xlane.f32.xlu2 %v419_v0 }
 0x3f2   :  { %v1103_v59 = vpop.xlane.xlu1 %1102 }
 0x3f5   :  { %v751_v31 = vpop.xlane.xlu0 %750 }
 0x3f6   :  { %v755_v47 = vsub.f32 %v2931_v32, %v751_v31 }
 0x3f8   :  { %v762_v63 = vmul.f32 1.442695, %v755_v47 }
 0x3fa   :  { %v748_v58 = vpop.xlane.xlu1 %747 }
 0x3fb   :  { %v754_v30 = vsub.f32 %v2937_v27, %v748_v58 }
 0x3fc   :  { %v400_v60 = vpop.xlane.xlu2 %399 }
 0x3fd   :  { %v404_v9 = vsub.f32 %v2939_v2, %v400_v60  ;;  %v760_v61 = vmul.f32 1.442695, %v754_v30 }
 0x3ff   :  { %v411_v29 = vmul.f32 1.442695, %v404_v9 }
 0x401   :  { %2077 = vpow2.f32 %v411_v29 }
 0x402   :  { %v1461_v5 = vpop.xlane.xlu1 %1460  ;;  %2079 = vpow2.f32 %v762_v63 }
 0x403   :  { %v1469_v6 = vsub.f32 %v2945_v21, %v1461_v5 }
 0x404   :  { %v1458_v24 = vpop.xlane.xlu2 %1457 }
 0x405   :  { %v1468_v7 = vsub.f32 %v2947_v62, %v1458_v24  ;;  %v1474_v32 = vmul.f32 1.442695, %v1469_v6 }
 0x407   :  { %v3006_v25 = vpop.eup %2077  ;;  %v1472_v37 = vmul.f32 1.442695, %v1468_v7  ;;  %818 = vrot.lane.b32.xlu2 %v2923_v51, %s2289_s8 }
 0x408   :  { %v422_v2 = vsel %vm388_vm14, %v3006_v25, 0.0  ;;  %v3013_v18 = vpop.eup %2079 }
 0x409   :  { %2081 = vpow2.f32 %v1472_v37  ;;  %423 = vadd.xlane.f32.xlu1 %v422_v2  ;;  %v773_v46 = vsel %vm388_vm14, %v3013_v18, 0.0 }
 0x40a   :  { %2083 = vpow2.f32 %v1474_v32  ;;  %v1109_v34 = vpop.xlane.xlu1 %1108 }
 0x40b   :  { %v1113_v40 = vsub.f32 %v2953_v14, %v1109_v34 }
 0x40c   :  { %v1106_v17 = vpop.xlane.xlu2 %1105 }
 0x40d   :  { %v1112_v62 = vsub.f32 %v2955_v4, %v1106_v17  ;;  %v1111_v4 = vsub.f32 %v2929_v3, %v1103_v59  ;;  %v1120_v41 = vmul.f32 1.442695, %v1113_v40 }
 0x40f   :  { %v3015_v33 = vpop.eup %2081  ;;  %v1118_v50 = vmul.f32 1.442695, %v1112_v62  ;;  %v1116_v26 = vmul.f32 1.442695, %v1111_v4 }
 0x410   :  { %v1480_v21 = vsel %vm388_vm14, %v3015_v33, 0.0  ;;  %v3022_v36 = vpop.eup %2083 }
 0x411   :  { %1481 = vadd.xlane.f32.xlu0 %v1480_v21  ;;  %774 = vadd.xlane.f32.xlu1 %v773_v46  ;;  %2085 = vpow2.f32 %v1118_v50  ;;  %v1483_v12 = vsel %vm388_vm14, %v3022_v36, 0.0 }
 0x412   :  { %2087 = vpow2.f32 %v1116_v26 }
 0x413   :  { %2089 = vpow2.f32 %v760_v61 }
 0x414   :  { %2091 = vpow2.f32 %v1120_v41 }
 0x417   :  { %v3026_v23 = vpop.eup %2085 }
 0x418   :  { %v1128_v42 = vsel %vm388_vm14, %v3026_v23, 0.0  ;;  %v3034_v38 = vpop.eup %2087 }
 0x419   :  { %1484 = vadd.xlane.f32.xlu0 %v1483_v12  ;;  %v1125_v3 = vsel %vm388_vm14, %v3034_v38, 0.0  ;;  %v3039_v55 = vpop.eup %2089 }
 0x41a   :  { %v770_v27 = vsel %vm388_vm14, %v3039_v55, 0.0  ;;  %v3044_v43 = vpop.eup %2091  ;;  %v1464_v57 = vpop.xlane.xlu0 %1463 }
 0x41b   :  { %v1131_v14 = vsel %vm388_vm14, %v3044_v43, 0.0 }
 0x421   :  { %1129 = vadd.xlane.f32.xlu0 %v1128_v42 }
 0x422   :  { %v415_v28 = vpop.xlane.xlu0 %414 }
 0x42a   :  { %1176 = vrot.lane.b32.xlu1 %v2923_v51, %s2290_s9 }
 0x430   :  { %1126 = vadd.xlane.f32.xlu2 %v1125_v3 }
 0x435   :  { %1509 = vrot.lane.b32.xlu0 %v2876_v20, %s2291_s10  ;;  %v1470_v20 = vsub.f32 %v2962_v19, %v1464_v57 }
 0x437   :  { %v1476_v39 = vmul.f32 1.442695, %v1470_v20 }
 0x438   :  { %771 = vadd.xlane.f32.xlu2 %v770_v27 }
 0x440   :  { %1132 = vadd.xlane.f32.xlu2 %v1131_v14 }
 0x442   :  { %v1467_v45 = vpop.xlane.xlu2 %1466 }
 0x443   :  { %v1471_v15 = vsub.f32 %v2976_v44, %v1467_v45 }
 0x445   :  { %v1478_v1 = vmul.f32 1.442695, %v1471_v15 }
 0x447   :  { %2093 = vpow2.f32 %v1478_v1 }
 0x448   :  { %2095 = vrcp.f32 %v415_v28 }
 0x44a   :  { %v766_v16 = vpop.xlane.xlu2 %765 }
 0x44d   :  { %v3050_v56 = vpop.eup %2093 }
 0x44e   :  { %v2096_v35 = vpop.eup %2095  ;;  %v1489_v13 = vsel %vm388_vm14, %v3050_v56, 0.0 }
 0x44f   :  { %v429_v44 = vmul.f32 %v2096_v35, %v2966_v22  ;;  %v769_v22 = vpop.xlane.xlu1 %768 }
 0x451   :  { %v433_v58 = vpack.c.bf16 %v429_v44, %v429_v44 }
 0x452   :  { %v418_v49 = vpop.xlane.xlu2 %417 }
 0x453   :  { %2097 = vrcp.f32 %v418_v49  ;;  %v439_v47 = vunpack.c.l.b16 %v433_v58 }
 0x454   :  { %1490 = vadd.xlane.f32.xlu1 %v1489_v13  ;;  %2099 = vpow2.f32 %v1476_v39 }
 0x458   :  { %1534 = vrot.lane.b32.xlu2 %v2923_v51, %s2291_s10 }
 0x459   :  { %v2098_v0 = vpop.eup %2097 }
 0x45a   :  { %v1124_v59 = vpop.xlane.xlu2 %1123  ;;  %v430_v19 = vmul.f32 %v2098_v0, %v2986_v48  ;;  %v3057_v31 = vpop.eup %2099 }
 0x45b   :  { %v1486_v9 = vsel %vm388_vm14, %v3057_v31, 0.0 }
 0x45c   :  { %v434_v60 = vpack.c.bf16 %v430_v19, %v430_v19 }
 0x45e   :  { %v440_v29 = vunpack.c.l.b16 %v434_v60 }
 0x45f   :  { %1487 = vadd.xlane.f32.xlu0 %v1486_v9 }
 0x460   :  { %v441_v63 = vpack.c.b16 %v440_v29, %v439_v47 }
 0x462   :  { %v421_v5 = vpop.xlane.xlu2 %420  ;;  %1926 = vmatmul.msk.bf16.vlgmr.msra.gmra.mxu3 %vm388_vm14, %v441_v63 }
 0x463   :  { %806 = vmatpush.bf16.msra.mxu3 %v2995_v53  ;;  %2101 = vrcp.f32 %v421_v5 }
 0x469   :  { %v2102_v24 = vpop.eup %2101 }
 0x46a   :  { %v819_v51 = vpop.permute.xlu2 %818  ;;  %v431_v7 = vmul.f32 %v2102_v24, %v2997_v10 }
 0x46b   :  { %831 = vmatpush.bf16.msrb.mxu0 %v819_v51 }
 0x46c   :  { %v435_v37 = vpack.c.bf16 %v431_v7, %v431_v7 }
 0x46e   :  { %v469_v17 = vunpack.c.l.b16 %v435_v37 }
 0x47c   :  { %v424_v48 = vpop.xlane.xlu1 %423 }
 0x47d   :  { %2103 = vrcp.f32 %v424_v48 }
 0x47e   :  { %2105 = vrcp.f32 %v766_v16 }
 0x47f   :  { %2107 = vrcp.f32 %v769_v22 }
 0x480   :  { %2109 = vrcp.f32 %v1124_v59 }
 0x483   :  { %v2104_v6 = vpop.eup %2103 }
 0x484   :  { %v432_v2 = vmul.f32 %v2104_v6, %v3006_v25  ;;  %v2106_v53 = vpop.eup %2105  ;;  %v1482_v46 = vpop.xlane.xlu0 %1481 }
 0x485   :  { %v2108_v50 = vpop.eup %2107  ;;  %v780_v12 = vmul.f32 %v2106_v53, %v2981_v52  ;;  %v775_v25 = vpop.xlane.xlu1 %774 }
 0x486   :  { %v436_v32 = vpack.c.bf16 %v432_v2, %v432_v2  ;;  %v781_v10 = vmul.f32 %v2108_v50, %v2971_v11  ;;  %v2110_v27 = vpop.eup %2109 }
 0x487   :  { %v784_v4 = vpack.c.bf16 %v780_v12, %v780_v12  ;;  %v1138_v52 = vmul.f32 %v2110_v27, %v2991_v8 }
 0x488   :  { %v470_v62 = vunpack.c.l.b16 %v436_v32  ;;  %v785_v42 = vpack.c.bf16 %v781_v10, %v781_v10 }
 0x489   :  { %v790_v30 = vunpack.c.l.b16 %v784_v4  ;;  %v1142_v14 = vpack.c.bf16 %v1138_v52, %v1138_v52 }
 0x48a   :  { %v471_v21 = vpack.c.b16 %v470_v62, %v469_v17  ;;  %v791_v61 = vunpack.c.l.b16 %v785_v42 }
 0x48b   :  { %v1148_v28 = vunpack.c.l.b16 %v1142_v14 }
 0x48c   :  { %1927 = vmatmul.msk.bf16.vlgmr.msrb.gmra.mxu3 %vm388_vm14, %v471_v21  ;;  %v1485_v26 = vpop.xlane.xlu0 %1484  ;;  %v792_v34 = vpack.c.b16 %v791_v61, %v790_v30 }
 0x48d   :  { %1164 = vmatpush.bf16.msrb.mxu3 %v3001_v54 }
 0x494   :  { %v1130_v3 = vpop.xlane.xlu0 %1129 }
 0x49c   :  { %v1177_v40 = vpop.permute.xlu1 %1176  ;;  %1937 = vmatmul.msk.bf16.vlgmr.msra.gmra.mxu3 %vm388_vm14, %v792_v34 }
 0x49d   :  { %1189 = vmatpush.bf16.msra.mxu0 %v1177_v40 }
 0x4a3   :  { %v1127_v41 = vpop.xlane.xlu2 %1126 }
 0x4a4   :  { %2111 = vrcp.f32 %v1127_v41 }
 0x4a5   :  { %2113 = vrcp.f32 %v775_v25 }
 0x4a6   :  { %2115 = vrcp.f32 %v1485_v26 }
 0x4a7   :  { %v1510_v11 = vpop.permute.xlu0 %1509 }
 0x4a8   :  { %1522 = vmatpush.bf16.msra.mxu3 %v1510_v11 }
 0x4aa   :  { %v2112_v54 = vpop.eup %2111 }
 0x4ab   :  { %v1139_v57 = vmul.f32 %v2112_v54, %v3034_v38  ;;  %v772_v45 = vpop.xlane.xlu2 %771  ;;  %v2114_v15 = vpop.eup %2113 }
 0x4ac   :  { %2117 = vrcp.f32 %v772_v45  ;;  %v783_v16 = vmul.f32 %v2114_v15, %v3013_v18  ;;  %v2116_v39 = vpop.eup %2115 }
 0x4ad   :  { %v1143_v1 = vpack.c.bf16 %v1139_v57, %v1139_v57  ;;  %2119 = vrcp.f32 %v1482_v46  ;;  %v1497_v38 = vmul.f32 %v2116_v39, %v3022_v36 }
 0x4ae   :  { %v787_v8 = vpack.c.bf16 %v783_v16, %v783_v16 }
 0x4af   :  { %v1149_v20 = vunpack.c.l.b16 %v1143_v1  ;;  %v1501_v60 = vpack.c.bf16 %v1497_v38, %v1497_v38  ;;  %v1976_v1 = vld [vmem:[#allocation11 + $0x8] sm:$0xff] }
 0x4b0   :  { %v816_v19 = vunpack.c.l.b16 %v787_v8  ;;  %1613 = vmatpush.bf16.msrb.mxu1 %v1976_v1 }
 0x4b1   :  { %v1150_v49 = vpack.c.b16 %v1149_v20, %v1148_v28  ;;  %v1507_v5 = vunpack.c.l.b16 %v1501_v60  ;;  %v1975_v28 = vld [vmem:[#allocation11] sm:$0xff] }
 0x4b2   :  { %v2118_v35 = vpop.eup %2117 }
 0x4b3   :  { %v782_v13 = vmul.f32 %v2118_v35, %v3039_v55  ;;  %v1133_v44 = vpop.xlane.xlu2 %1132  ;;  %1948 = vmatmul.msk.bf16.vlgmr.msrb.gmra.mxu3 %vm388_vm14, %v1150_v49  ;;  %v2120_v0 = vpop.eup %2119 }
 0x4b4   :  { %2121 = vrcp.f32 %v1133_v44  ;;  %v1496_v58 = vmul.f32 %v2120_v0, %v3015_v33  ;;  %1614 = vmatpush.bf16.msrb.mxu1 %v1975_v28 }
 0x4b5   :  { %v786_v59 = vpack.c.bf16 %v782_v13, %v782_v13  ;;  %2123 = vrcp.f32 %v1130_v3 }
 0x4b6   :  { %v1500_v29 = vpack.c.bf16 %v1496_v58, %v1496_v58 }
 0x4b7   :  { %v815_v18 = vunpack.c.l.b16 %v786_v59 }
 0x4b8   :  { %v1506_v22 = vunpack.c.l.b16 %v1500_v29 }
 0x4b9   :  { %v817_v9 = vpack.c.b16 %v816_v19, %v815_v18  ;;  %v2000_v18 = vld [vmem:[%s3256_s5] ss:$0 sm:$0xff]  ;;  %s2294_s5 = smov 32  }
 0x4ba   :  { %v2122_v47 = vpop.eup %2121  ;;  %v1508_v48 = vpack.c.b16 %v1507_v5, %v1506_v22 }
 0x4bb   :  { %v1535_v63 = vpop.permute.xlu2 %1534  ;;  %1938 = vmatmul.msk.bf16.vlgmr.msrb.gmra.mxu0 %vm388_vm14, %v817_v9  ;;  %v2124_v55 = vpop.eup %2123  ;;  %v1141_v51 = vmul.f32 %v2122_v47, %v3044_v43 }
 0x4bc   :  { %1547 = vmatpush.bf16.msrb.mxu0 %v1535_v63  ;;  %v1140_v36 = vmul.f32 %v2124_v55, %v3026_v23 }
 0x4bd   :  { %v1145_v24 = vpack.c.bf16 %v1141_v51, %v1141_v51 }
 0x4be   :  { %v1144_v7 = vpack.c.bf16 %v1140_v36, %v1140_v36 }
 0x4bf   :  { %v1174_v33 = vunpack.c.l.b16 %v1145_v24 }
 0x4c0   :  { %v1173_v6 = vunpack.c.l.b16 %v1144_v7 }
 0x4c2   :  { %v1175_v37 = vpack.c.b16 %v1174_v33, %v1173_v6 }
 0x4c3   :  { %1959 = vmatmul.msk.bf16.vlgmr.msra.gmra.mxu3 %vm388_vm14, %v1508_v48 }
 0x4c7   :  { %v1491_v2 = vpop.xlane.xlu1 %1490 }
 0x4c8   :  { %2125 = vrcp.f32 %v1491_v2 }
 0x4cb   :  { %1949 = vmatmul.msk.bf16.vlgmr.msra.gmra.mxu0 %vm388_vm14, %v1175_v37 }
 0x4ce   :  { %v2126_v17 = vpop.eup %2125 }
 0x4cf   :  { %v1499_v43 = vmul.f32 %v2126_v17, %v3050_v56 }
 0x4d1   :  { %v1503_v21 = vpack.c.bf16 %v1499_v43, %v1499_v43 }
 0x4d2   :  { %v1488_v32 = vpop.xlane.xlu0 %1487 }
 0x4d3   :  { %2127 = vrcp.f32 %v1488_v32  ;;  %v1532_v46 = vunpack.c.l.b16 %v1503_v21 }
 0x4d9   :  { %v2128_v62 = vpop.eup %2127 }
 0x4da   :  { %v1498_v23 = vmul.f32 %v2128_v62, %v3057_v31 }
 0x4dc   :  { %v1502_v53 = vpack.c.bf16 %v1498_v23, %v1498_v23 }
 0x4de   :  { %v1531_v50 = vunpack.c.l.b16 %v1502_v53 }
 0x4e0   :  { %v1533_v12 = vpack.c.b16 %v1532_v46, %v1531_v50 }
 0x4e2   :  { %1960 = vmatmul.msk.bf16.vlgmr.msrb.gmra.mxu0 %vm388_vm14, %v1533_v12 }
 0x4e5   :  { %v462_v10 = vpop.f32.mrf.mxu3 }
 0x4e6   :  { %497 = vst.msk [vmem:[#allocation2] sm:$0xff] %vm161_vm1, %v462_v10 }
 0x4ed   :  { %v464_v4 = vpop.f32.mrf.mxu3 }
 0x4ee   :  { %498 = vst.msk [vmem:[#allocation2 + $0x8] sm:$0xff] %vm161_vm1, %v464_v4 }
 0x50f   :  { %v492_v42 = vpop.f32.mrf.mxu3 }
 0x510   :  { %499 = vst.msk [vmem:[#allocation2 + $0x10] sm:$0xff] %vm161_vm1, %v492_v42 }
 0x517   :  { %v494_v56 = vpop.f32.mrf.mxu3 }
 0x518   :  { %500 = vst.msk [vmem:[#allocation2 + $0x18] sm:$0xff] %vm161_vm1, %v494_v56  ;;  %vm854_vm1 = vcmask 130112  }
 0x51f   :  { %v808_v25 = vpop.f32.mrf.mxu3 }
 0x520   :  { %842 = vrot.lane.b32.xlu0 %v808_v25, %s2280_s17 }
 0x527   :  { %v810_v31 = vpop.f32.mrf.mxu3 }
 0x528   :  { %844 = vrot.lane.b32.xlu2 %v810_v31, %s2280_s17 }
 0x536   :  { %v1166_v26 = vpop.f32.mrf.mxu3 }
 0x537   :  { %1200 = vrot.lane.b32.xlu1 %v1166_v26, %s2292_s1 }
 0x538   :  { %v833_v30 = vpop.f32.mrf.mxu0 }
 0x539   :  { %846 = vrot.lane.b32.xlu2 %v833_v30, %s2280_s17 }
 0x53e   :  { %v1168_v61 = vpop.f32.mrf.mxu3 }
 0x540   :  { %v835_v34 = vpop.f32.mrf.mxu0 }
 0x541   :  { %1202 = vrot.lane.b32.xlu2 %v1168_v61, %s2292_s1 }
 0x546   :  { %v1524_v40 = vpop.f32.mrf.mxu3 }
 0x548   :  { %v1191_v3 = vpop.f32.mrf.mxu0 }
 0x549   :  { %1558 = vrot.lane.b32.xlu2 %v1524_v40, %s2293_s11 }
 0x54e   :  { %v1526_v41 = vpop.f32.mrf.mxu3 }
 0x54f   :  { %1560 = vrot.lane.b32.xlu0 %v1526_v41, %s2293_s11 }
 0x550   :  { %v1193_v27 = vpop.f32.mrf.mxu0 }
 0x551   :  { %1206 = vrot.lane.b32.xlu1 %v1193_v27, %s2292_s1  ;;  %1204 = vrot.lane.b32.xlu2 %v1191_v3, %s2292_s1 }
 0x557   :  { %848 = vrot.lane.b32.xlu0 %v835_v34, %s2280_s17 }
 0x55f   :  { %v1549_v52 = vpop.f32.mrf.mxu0 }
 0x560   :  { %1562 = vrot.lane.b32.xlu0 %v1549_v52, %s2293_s11 }
 0x567   :  { %v1551_v11 = vpop.f32.mrf.mxu0 }
 0x568   :  { %1564 = vrot.lane.b32.xlu2 %v1551_v11, %s2293_s11 }
 0x582   :  { %v845_v54 = vpop.permute.xlu2 %844 }
 0x583   :  { %856 = vst.msk [vmem:[#allocation2 + $0x8] sm:$0xff] %vm854_vm1, %v845_v54 }
 0x592   :  { %v843_v14 = vpop.permute.xlu0 %842 }
 0x593   :  { %855 = vst.msk [vmem:[#allocation2] sm:$0xff] %vm854_vm1, %v843_v14  ;;  %v847_v57 = vpop.permute.xlu2 %846 }
 0x594   :  { %857 = vst.msk [vmem:[#allocation2 + $0x10] sm:$0xff] %vm854_vm1, %v847_v57 }
 0x59b   :  { %v1203_v45 = vpop.permute.xlu2 %1202 }
 0x59c   :  { %1214 = vst.msk [vmem:[#allocation2 + $0x8] sm:$0xff] %vm1212_vm15, %v1203_v45 }
 0x5a3   :  { %v1559_v15 = vpop.permute.xlu2 %1558 }
 0x5a9   :  { %v1201_v16 = vpop.permute.xlu1 %1200 }
 0x5aa   :  { %1213 = vst.msk [vmem:[#allocation2] sm:$0xff] %vm1212_vm15, %v1201_v16 }
 0x5ab   :  { %1571 = vst.msk [vmem:[#allocation2] sm:$0xff] %vm1570_vm2, %v1559_v15  ;;  %v1205_v20 = vpop.permute.xlu2 %1204 }
 0x5ac   :  { %1215 = vst.msk [vmem:[#allocation2 + $0x10] sm:$0xff] %vm1212_vm15, %v1205_v20 }
 0x5b2   :  { %v1575_v35 = vld [vmem:[#allocation2] sm:$0xff] }
 0x5c1   :  { %v1561_v39 = vpop.permute.xlu0 %1560 }
 0x5c2   :  { %1572 = vst.msk [vmem:[#allocation2 + $0x8] sm:$0xff] %vm1570_vm2, %v1561_v39  ;;  %v1565_v0 = vpop.permute.xlu2 %1564 }
 0x5c3   :  { %v1207_v13 = vpop.permute.xlu1 %1206 }
 0x5c9   :  { %v849_v49 = vpop.permute.xlu0 %848  ;;  %v1576_v8 = vld [vmem:[#allocation2 + $0x8] sm:$0xff] }
 0x5ca   :  { %858 = vst.msk [vmem:[#allocation2 + $0x18] sm:$0xff] %vm854_vm1, %v849_v49  ;;  %v1579_v44 = vpack.c.bf16 %v1576_v8, %v1575_v35 }
 0x5cb   :  { %1216 = vst.msk [vmem:[#allocation2 + $0x18] sm:$0xff] %vm1212_vm15, %v1207_v13 }
 0x5cc   :  { %1574 = vst.msk [vmem:[#allocation2 + $0x18] sm:$0xff] %vm1570_vm2, %v1565_v0  ;;  %1969 = vmatmul.msk.bf16.vlgmr.msrb.gmra.mxu1 %vm131_vm0, %v1579_v44 }
 0x5d2   :  { %v1563_v38 = vpop.permute.xlu0 %1562 }
 0x5d3   :  { %1573 = vst.msk [vmem:[#allocation2 + $0x10] sm:$0xff] %vm1570_vm2, %v1563_v38  ;;  %v1578_v19 = vld [vmem:[#allocation2 + $0x18] sm:$0xff] }
 0x5da   :  { %v1577_v59 = vld [vmem:[#allocation2 + $0x10] sm:$0xff] }
 0x5db   :  { %v1580_v58 = vpack.c.bf16 %v1578_v19, %v1577_v59 }
 0x5dd   :  { %1970 = vmatmul.msk.bf16.gmra.mxu1 %vm131_vm0, %v1580_v58  ;;  %vm1637_vm0 = vcmask 1045509  }
 0x649   :  { %v1616_v60 = vpop.f32.mrf.mxu1 }
 0x64a   :  { %v3110_v9 = vadd.f32 %v2000_v18, %v1616_v60 }
 0x64c   :  { %1656 = vst.sshfl [vmem:[#allocation1] sm:$0xff pattern:$0x73625140] %v3110_v9  ;;  %v1644_v51 = vrot.slane %v3110_v9, 1 }
 0x651   :  { %v1618_v47 = vpop.f32.mrf.mxu1 }
 0x652   :  { %v3124_v24 = vadd.f32 %v2000_v18, %v1618_v47 }
 0x653   :  { %v1658_v29 = vld [vmem:[#allocation1 + $0x1] ss:$4 sm:$0xff] }
 0x654   :  { %1674 = vst.sshfl [vmem:[#allocation1] sm:$0xff pattern:$0x73625140] %v3110_v9  ;;  %v1769_v21 = vrot.slane %v3124_v24, 1 }
 0x65a   :  { %v1621_v63 = vpop.f32.mrf.mxu1 }
 0x65b   :  { %v1676_v55 = vld [vmem:[#allocation1 + $0x1] ss:$4 sm:$0xff]  ;;  %v3114_v5 = vadd.f32 %v2000_v18, %v1621_v63 }
 0x65c   :  { %1692 = vst.sshfl [vmem:[#allocation1] sm:$0xff pattern:$0x73625140] %v3110_v9  ;;  %v1680_v3 = vrot.slane %v1676_v55, 1 }
 0x65d   :  { %1659 = vst.sshfl [vmem:[#allocation1 + $0x20] sm:$0xff pattern:$0x73625140] %v3114_v5  ;;  %v1647_v22 = vsel %vm1633_vm3, %v3114_v5, %v1644_v51  ;;  %v1632_v36 = vrot.slane %v3114_v5, 7 }
 0x65e   :  { %v1648_v48 = vsel %vm1635_vm4, %v3114_v5, %v1647_v22 }
 0x65f   :  { %v1649_v7 = vsel %vm1637_vm0, %v3114_v5, %v1648_v48  ;;  %v1634_v33 = vsel %vm1633_vm3, %v1632_v36, %v3110_v9 }
 0x660   :  { %v1650_v6 = vsel %vm1639_vm5, %v3114_v5, %v1649_v7  ;;  %v1636_v37 = vsel %vm1635_vm4, %v1632_v36, %v1634_v33 }
 0x661   :  { %1651 = vrot.lane.b32.xlu1 %v1650_v6, %s2294_s5  ;;  %v1638_v2 = vsel %vm1637_vm0, %v1632_v36, %v1636_v37 }
 0x662   :  { %v1623_v32 = vpop.f32.mrf.mxu1  ;;  %v1640_v17 = vsel %vm1639_vm5, %v1632_v36, %v1638_v2 }
 0x663   :  { %v1694_v43 = vld [vmem:[#allocation1 + $0x2] ss:$4 sm:$0xff]  ;;  %v3136_v62 = vadd.f32 %v2000_v18, %v1623_v32  ;;  %1643 = vst.msk [vmem:[#allocation13] sm:$0x3] %vm1642_vm6, %v1640_v17 }
 0x664   :  { %1707 = vst.sshfl [vmem:[#allocation1] sm:$0xff pattern:$0x73625140] %v3110_v9  ;;  %v1661_v23 = vld [vmem:[#allocation1 + $0x21] ss:$4 sm:$0xff] }
 0x665   :  { %v1772_v53 = vsel %vm1633_vm3, %v3136_v62, %v1769_v21  ;;  %v1664_v46 = vrot.slane %v1661_v23, 7  ;;  %1677 = vst.sshfl [vmem:[#allocation1 + $0x20] sm:$0xff pattern:$0x73625140] %v3114_v5  ;;  %v1762_v50 = vrot.slane %v3136_v62, 7 }
 0x666   :  { %v1773_v12 = vsel %vm1635_vm4, %v3136_v62, %v1772_v53 }
 0x667   :  { %v1774_v10 = vsel %vm1637_vm0, %v3136_v62, %v1773_v12  ;;  %v1665_v4 = vsel %vm1633_vm3, %v1664_v46, %v1658_v29  ;;  %v1763_v42 = vsel %vm1633_vm3, %v1762_v50, %v3124_v24 }
 0x668   :  { %v1775_v56 = vsel %vm1639_vm5, %v3136_v62, %v1774_v10  ;;  %v1666_v25 = vsel %vm1635_vm4, %v1664_v46, %v1665_v4  ;;  %v1764_v31 = vsel %vm1635_vm4, %v1762_v50, %v1763_v42 }
 0x669   :  { %1776 = vrot.lane.b32.xlu2 %v1775_v56, %s2294_s5  ;;  %v1667_v26 = vsel %vm1637_vm0, %v1664_v46, %v1666_v25  ;;  %v1765_v30 = vsel %vm1637_vm0, %v1762_v50, %v1764_v31 }
 0x66a   :  { %v1668_v61 = vsel %vm1639_vm5, %v1664_v46, %v1667_v26  ;;  %v1766_v34 = vsel %vm1639_vm5, %v1762_v50, %v1765_v30 }
 0x66b   :  { %v1709_v40 = vld [vmem:[#allocation1 + $0x2] ss:$4 sm:$0xff]  ;;  %1669 = vrot.lane.b32.xlu0 %v1668_v61, %s2274_s29  ;;  %1768 = vst.msk [vmem:[#allocation13 + $0x4] sm:$0x3] %vm1642_vm6, %v1766_v34 }
 0x66c   :  { %1724 = vst.sshfl [vmem:[#allocation1] sm:$0xff pattern:$0x73625140] %v3110_v9  ;;  %v1679_v41 = vld [vmem:[#allocation1 + $0x21] ss:$4 sm:$0xff]  ;;  %v1713_v20 = vrot.slane %v1709_v40, 1 }
 0x66d   :  { %v1683_v27 = vsel %vm1633_vm3, %v1679_v41, %v1680_v3  ;;  %1695 = vst.sshfl [vmem:[#allocation1 + $0x20] sm:$0xff pattern:$0x73625140] %v3114_v5 }
 0x66e   :  { %v1684_v52 = vsel %vm1635_vm4, %v1679_v41, %v1683_v27 }
 0x66f   :  { %v1685_v11 = vsel %vm1637_vm0, %v1679_v41, %v1684_v52 }
 0x670   :  { %v1686_v54 = vsel %vm1639_vm5, %v1679_v41, %v1685_v11 }
 0x671   :  { %1687 = vrot.lane.b32.xlu2 %v1686_v54, %s2284_s22 }
 0x673   :  { %v1726_v14 = vld [vmem:[#allocation1 + $0x3] ss:$4 sm:$0xff] }
 0x674   :  { %v1697_v57 = vld [vmem:[#allocation1 + $0x22] ss:$4 sm:$0xff]  ;;  %1741 = vst.sshfl [vmem:[#allocation1] sm:$0xff pattern:$0x73625140] %v3110_v9 }
 0x675   :  { %1710 = vst.sshfl [vmem:[#allocation1 + $0x20] sm:$0xff pattern:$0x73625140] %v3114_v5  ;;  %v1700_v45 = vrot.slane %v1697_v57, 7 }
 0x677   :  { %v1701_v15 = vsel %vm1633_vm3, %v1700_v45, %v1694_v43 }
 0x678   :  { %v1702_v1 = vsel %vm1635_vm4, %v1700_v45, %v1701_v15 }
 0x679   :  { %v1703_v28 = vsel %vm1637_vm0, %v1700_v45, %v1702_v1 }
 0x67a   :  { %v1704_v16 = vsel %vm1639_vm5, %v1700_v45, %v1703_v28 }
 0x67b   :  { %v1743_v39 = vld [vmem:[#allocation1 + $0x3] ss:$4 sm:$0xff]  ;;  %1706 = vst.msk [vmem:[#allocation13 + $0x2] sm:$0x3] %vm1642_vm6, %v1704_v16 }
 0x67c   :  { %v1712_v49 = vld [vmem:[#allocation1 + $0x22] ss:$4 sm:$0xff]  ;;  %1780 = vst.sshfl [vmem:[#allocation1] sm:$0xff pattern:$0x73625140] %v3124_v24 }
 0x67d   :  { %v1716_v35 = vsel %vm1633_vm3, %v1712_v49, %v1713_v20  ;;  %1727 = vst.sshfl [vmem:[#allocation1 + $0x20] sm:$0xff pattern:$0x73625140] %v3114_v5 }
 0x67e   :  { %v1717_v8 = vsel %vm1635_vm4, %v1712_v49, %v1716_v35 }
 0x67f   :  { %v1718_v13 = vsel %vm1637_vm0, %v1712_v49, %v1717_v8 }
 0x680   :  { %v1719_v44 = vsel %vm1639_vm5, %v1712_v49, %v1718_v13 }
 0x681   :  { %1720 = vrot.lane.b32.xlu0 %v1719_v44, %s2294_s5 }
 0x683   :  { %v1782_v0 = vld [vmem:[#allocation1 + $0x1] ss:$4 sm:$0xff] }
 0x684   :  { %v1729_v38 = vld [vmem:[#allocation1 + $0x23] ss:$4 sm:$0xff]  ;;  %1797 = vst.sshfl [vmem:[#allocation1] sm:$0xff pattern:$0x73625140] %v3124_v24 }
 0x685   :  { %v1732_v59 = vrot.slane %v1729_v38, 7  ;;  %1744 = vst.sshfl [vmem:[#allocation1 + $0x20] sm:$0xff pattern:$0x73625140] %v3114_v5 }
 0x687   :  { %v1733_v19 = vsel %vm1633_vm3, %v1732_v59, %v1726_v14 }
 0x688   :  { %v1734_v58 = vsel %vm1635_vm4, %v1732_v59, %v1733_v19 }
 0x689   :  { %v1735_v18 = vsel %vm1637_vm0, %v1732_v59, %v1734_v58 }
 0x68a   :  { %v1736_v60 = vsel %vm1639_vm5, %v1732_v59, %v1735_v18 }
 0x68b   :  { %1737 = vrot.lane.b32.xlu2 %v1736_v60, %s2274_s29  ;;  %v1799_v9 = vld [vmem:[#allocation1 + $0x1] ss:$4 sm:$0xff] }
 0x68c   :  { %v1746_v47 = vld [vmem:[#allocation1 + $0x23] ss:$4 sm:$0xff]  ;;  %1814 = vst.sshfl [vmem:[#allocation1] sm:$0xff pattern:$0x73625140] %v3124_v24  ;;  %v1803_v26 = vrot.slane %v1799_v9, 1 }
 0x68d   :  { %1783 = vst.sshfl [vmem:[#allocation1 + $0x20] sm:$0xff pattern:$0x73625140] %v3136_v62 }
 0x693   :  { %v1816_v29 = vld [vmem:[#allocation1 + $0x2] ss:$4 sm:$0xff] }
 0x694   :  { %v1785_v63 = vld [vmem:[#allocation1 + $0x21] ss:$4 sm:$0xff]  ;;  %1829 = vst.sshfl [vmem:[#allocation1] sm:$0xff pattern:$0x73625140] %v3124_v24 }
 0x695   :  { %v1788_v55 = vrot.slane %v1785_v63, 7  ;;  %1800 = vst.sshfl [vmem:[#allocation1 + $0x20] sm:$0xff pattern:$0x73625140] %v3136_v62 }
 0x697   :  { %v1789_v5 = vsel %vm1633_vm3, %v1788_v55, %v1782_v0 }
 0x698   :  { %v1790_v51 = vsel %vm1635_vm4, %v1788_v55, %v1789_v5 }
 0x699   :  { %v1791_v22 = vsel %vm1637_vm0, %v1788_v55, %v1790_v51 }
 0x69a   :  { %v1792_v36 = vsel %vm1639_vm5, %v1788_v55, %v1791_v22 }
 0x69b   :  { %1793 = vrot.lane.b32.xlu1 %v1792_v36, %s2274_s29  ;;  %v1831_v48 = vld [vmem:[#allocation1 + $0x2] ss:$4 sm:$0xff] }
 0x69c   :  { %v1802_v7 = vld [vmem:[#allocation1 + $0x21] ss:$4 sm:$0xff]  ;;  %1846 = vst.sshfl [vmem:[#allocation1] sm:$0xff pattern:$0x73625140] %v3124_v24  ;;  %v1835_v21 = vrot.slane %v1831_v48, 1 }
 0x69d   :  { %1817 = vst.sshfl [vmem:[#allocation1 + $0x20] sm:$0xff pattern:$0x73625140] %v3136_v62  ;;  %v1806_v3 = vsel %vm1633_vm3, %v1802_v7, %v1803_v26 }
 0x69e   :  { %v1807_v52 = vsel %vm1635_vm4, %v1802_v7, %v1806_v3 }
 0x69f   :  { %v1808_v57 = vsel %vm1637_vm0, %v1802_v7, %v1807_v52 }
 0x6a0   :  { %v1809_v15 = vsel %vm1639_vm5, %v1802_v7, %v1808_v57 }
 0x6a3   :  { %v1848_v33 = vld [vmem:[#allocation1 + $0x3] ss:$4 sm:$0xff] }
 0x6a4   :  { %v1819_v6 = vld [vmem:[#allocation1 + $0x22] ss:$4 sm:$0xff]  ;;  %1863 = vst.sshfl [vmem:[#allocation1] sm:$0xff pattern:$0x73625140] %v3124_v24  ;;  %v1747_v24 = vrot.slane %v1743_v39, 1 }
 0x6a5   :  { %1832 = vst.sshfl [vmem:[#allocation1 + $0x20] sm:$0xff pattern:$0x73625140] %v3136_v62  ;;  %v1822_v37 = vrot.slane %v1819_v6, 7 }
 0x6a6   :  { %v1750_v12 = vsel %vm1633_vm3, %v1746_v47, %v1747_v24 }
 0x6a7   :  { %v1823_v2 = vsel %vm1633_vm3, %v1822_v37, %v1816_v29  ;;  %v1751_v4 = vsel %vm1635_vm4, %v1746_v47, %v1750_v12 }
 0x6a8   :  { %v1824_v32 = vsel %vm1635_vm4, %v1822_v37, %v1823_v2  ;;  %v1752_v56 = vsel %vm1637_vm0, %v1746_v47, %v1751_v4 }
 0x6a9   :  { %v1825_v17 = vsel %vm1637_vm0, %v1822_v37, %v1824_v32  ;;  %v1753_v30 = vsel %vm1639_vm5, %v1746_v47, %v1752_v56 }
 0x6aa   :  { %v1826_v43 = vsel %vm1639_vm5, %v1822_v37, %v1825_v17 }
 0x6ab   :  { %1828 = vst.msk [vmem:[#allocation13 + $0x6] sm:$0x3] %vm1642_vm6, %v1826_v43  ;;  %v1865_v34 = vld [vmem:[#allocation1 + $0x3] ss:$4 sm:$0xff] }
 0x6ac   :  { %v1834_v23 = vld [vmem:[#allocation1 + $0x22] ss:$4 sm:$0xff]  ;;  %v1869_v27 = vrot.slane %v1865_v34, 1 }
 0x6ad   :  { %v1838_v53 = vsel %vm1633_vm3, %v1834_v23, %v1835_v21  ;;  %1849 = vst.sshfl [vmem:[#allocation1 + $0x20] sm:$0xff pattern:$0x73625140] %v3136_v62 }
 0x6ae   :  { %v1839_v46 = vsel %vm1635_vm4, %v1834_v23, %v1838_v53 }
 0x6af   :  { %v1840_v50 = vsel %vm1637_vm0, %v1834_v23, %v1839_v46 }
 0x6b0   :  { %v1841_v10 = vsel %vm1639_vm5, %v1834_v23, %v1840_v50 }
 0x6b1   :  { %1842 = vrot.lane.b32.xlu1 %v1841_v10, %s2294_s5 }
 0x6b4   :  { %v1851_v42 = vld [vmem:[#allocation1 + $0x23] ss:$4 sm:$0xff] }
 0x6b5   :  { %v1854_v25 = vrot.slane %v1851_v42, 7  ;;  %1866 = vst.sshfl [vmem:[#allocation1 + $0x20] sm:$0xff pattern:$0x73625140] %v3136_v62 }
 0x6b7   :  { %v1855_v31 = vsel %vm1633_vm3, %v1854_v25, %v1848_v33 }
 0x6b8   :  { %v1856_v61 = vsel %vm1635_vm4, %v1854_v25, %v1855_v31 }
 0x6b9   :  { %1754 = vrot.lane.b32.xlu1 %v1753_v30, %s2284_s22  ;;  %v1857_v40 = vsel %vm1637_vm0, %v1854_v25, %v1856_v61 }
 0x6ba   :  { %v1858_v41 = vsel %vm1639_vm5, %v1854_v25, %v1857_v40 }
 0x6bb   :  { %1859 = vrot.lane.b32.xlu0 %v1858_v41, %s2274_s29  ;;  %s2295_s29 = smov [#allocation13]  }
 0x6bc   :  { %v1868_v62 = vld [vmem:[#allocation1 + $0x23] ss:$4 sm:$0xff]  ;;  %s1885_s13 = sshll.u32 %s2295_s29, 4  ;;  %s1886_s13 = int_to_ptr.vmem [resolvable:$true] %s1885_s13 }
 0x6bd   :  { %v1872_v11 = vsel %vm1633_vm3, %v1868_v62, %v1869_v27 }
 0x6be   :  { %v1873_v54 = vsel %vm1635_vm4, %v1868_v62, %v1872_v11 }
 0x6bf   :  { %v1874_v14 = vsel %vm1637_vm0, %v1868_v62, %v1873_v54 }
 0x6c0   :  { %v1875_v45 = vsel %vm1639_vm5, %v1868_v62, %v1874_v14 }
 0x6c1   :  { %1876 = vrot.lane.b32.xlu2 %v1875_v45, %s2284_s22 }
 0x6c3   :  { %v1777_v1 = vpop.permute.xlu2 %1776  ;;  %1810 = vrot.lane.b32.xlu0 %v1809_v15, %s2284_s22 }
 0x6c4   :  { %1779 = vst.msk [vmem:[#allocation13 + $0x4] sm:$0x3] %vm1654_vm7, %v1777_v1 }
 0x6cb   :  { %v1688_v20 = vpop.permute.xlu2 %1687 }
 0x6d3   :  { %v1652_v28 = vpop.permute.xlu1 %1651 }
 0x6d4   :  { %1655 = vst.msk [vmem:[#allocation13] sm:$0x3] %vm1654_vm7, %v1652_v28 }
 0x6dd   :  { %v1670_v16 = vpop.permute.xlu0 %1669 }
 0x6de   :  { %1673 = vst.msk [vmem:[#allocation13] sm:$0x3] %vm1672_vm8, %v1670_v16 }
 0x6df   :  { %1691 = vst.msk [vmem:[#allocation13] sm:$0x3] %vm1690_vm9, %v1688_v20 }
 0x6e5   :  { %v1738_v49 = vpop.permute.xlu2 %1737 }
 0x6f3   :  { %v1721_v39 = vpop.permute.xlu0 %1720 }
 0x6f4   :  { %1723 = vst.msk [vmem:[#allocation13 + $0x2] sm:$0x3] %vm1654_vm7, %v1721_v39 }
 0x6f5   :  { %1740 = vst.msk [vmem:[#allocation13 + $0x2] sm:$0x3] %vm1672_vm8, %v1738_v49 }
 0x70d   :  { %v1794_v35 = vpop.permute.xlu1 %1793 }
 0x70e   :  { %1796 = vst.msk [vmem:[#allocation13 + $0x4] sm:$0x3] %vm1672_vm8, %v1794_v35 }
 0x71b   :  { %v1877_v0 = vpop.permute.xlu2 %1876 }
 0x723   :  { %v1843_v8 = vpop.permute.xlu1 %1842 }
 0x724   :  { %1845 = vst.msk [vmem:[#allocation13 + $0x6] sm:$0x3] %vm1654_vm7, %v1843_v8 }
 0x72b   :  { %v1755_v13 = vpop.permute.xlu1 %1754 }
 0x72c   :  { %1757 = vst.msk [vmem:[#allocation13 + $0x2] sm:$0x3] %vm1690_vm9, %v1755_v13 }
 0x72d   :  { %v1860_v44 = vpop.permute.xlu0 %1859 }
 0x72e   :  { %1862 = vst.msk [vmem:[#allocation13 + $0x6] sm:$0x3] %vm1672_vm8, %v1860_v44 }
 0x72f   :  { %1879 = vst.msk [vmem:[#allocation13 + $0x6] sm:$0x3] %vm1690_vm9, %v1877_v0 }
 0x735   :  { %v1811_v38 = vpop.permute.xlu0 %1810 }
 0x736   :  { %1813 = vst.msk [vmem:[#allocation13 + $0x4] sm:$0x3] %vm1690_vm9, %v1811_v38 }
 0x737   :  { %1890 = dma.vmem_to_hbm [thread:$0]  %s1886_s13, 128, %s1888_s16, [#allocation5]  }
 0x738   :  { %2271 = dma.done.wait [#allocation5], 128  }
 0x739   :  { %2272 = vsyncadd [#allocation5], 4294967168 }
 0x73a   :  { %1895 = vsyncpa [#allocation4], 1 }
 0x73b   :  { %1896 = vsyncpa [#allocation8], 1 }
 0x73c   :  { %1897 = vsyncpa [#allocation12], 1 }
 0x73d   :  { %1898 = vsyncpa [#allocation5], 1 }
 0x73e   :  { %1899 = vsyncpa [#allocation6], 1 }

</bundles_post_ra>
